<compile_context>
chip_gen: v5e
topology: v5e:2x2
jax: 0.10.0
libtpu: 0.0.40
codegen_flags: <defaults>
</compile_context>

<pallas_src>
import functools
import math

import jax
import jax.numpy as jnp
from jax import lax
from jax.experimental import pallas as pl
from jax.experimental.pallas import tpu as pltpu


def _layer_norm(x, w, b, eps=1e-6):
    # eps=1e-6 matches the module: nn.LayerNorm(..., eps=1e-06)
    mu = jnp.mean(x, axis=-1, keepdims=True)
    xc = x - mu
    var = jnp.mean(xc * xc, axis=-1, keepdims=True)
    return xc * lax.rsqrt(var + eps) * w + b


def _gelu_exact(x):
    # nn.GELU default = exact erf formulation (kept for semantic fidelity).
    return 0.5 * x * (1.0 + lax.erf(x * (1.0 / math.sqrt(2.0))))


def transformer_block_kernel(num_heads, batch, seq,
                             x_ref,
                             ln_in_w_ref, ln_in_b_ref,
                             wq_ref, bq_ref, wk_ref, bk_ref, wv_ref, bv_ref,
                             wo_ref, bo_ref,
                             ln1_w_ref, ln1_b_ref,
                             w1_ref, b1_ref, w2_ref, b2_ref,
                             ln2_w_ref, ln2_b_ref,
                             out_ref):
    x = x_ref[...].astype(jnp.float32)                       # (B*S, E)
    embed = x.shape[-1]

    # ---- LayerNorm on inputs (all B*S rows at once) -------------------------
    xn = _layer_norm(x, ln_in_w_ref[...], ln_in_b_ref[...])

    # ---- Q/K/V projections, per head, full M = B*S --------------------------
    # wq_ref/wk_ref/wv_ref are (H, E, hd), pre-transposed on the host
    # (attention scale already folded into wq/bq) -> plain 2D MXU matmuls,
    # no in-kernel transposes or lane slicing.
    q_heads = [jnp.dot(xn, wq_ref[h], preferred_element_type=jnp.float32) + bq_ref[h]
               for h in range(num_heads)]                    # each (B*S, hd)
    k_heads = [jnp.dot(xn, wk_ref[h], preferred_element_type=jnp.float32) + bk_ref[h]
               for h in range(num_heads)]
    v_heads = [jnp.dot(xn, wv_ref[h], preferred_element_type=jnp.float32) + bv_ref[h]
               for h in range(num_heads)]

    # ---- attention: heads batched on the leading axis, per batch element ----
    attn_rows = []
    for b in range(batch):
        lo = b * seq
        qb = jnp.stack([q_heads[h][lo:lo + seq] for h in range(num_heads)], axis=0)
        kb = jnp.stack([k_heads[h][lo:lo + seq] for h in range(num_heads)], axis=0)
        vb = jnp.stack([v_heads[h][lo:lo + seq] for h in range(num_heads)], axis=0)
        s = jnp.einsum('hqd,hkd->hqk', qb, kb,
                       preferred_element_type=jnp.float32)   # (H, S, S)
        s = s - jnp.max(s, axis=-1, keepdims=True)
        e = jnp.exp(s)
        p_attn = e * pl.reciprocal(jnp.sum(e, axis=-1, keepdims=True), approx=True)
        o = jnp.einsum('hqk,hkd->hqd', p_attn, vb,
                       preferred_element_type=jnp.float32)   # (H, S, hd)
        # Output projection as a per-head accumulate: avoids any transpose or
        # lane-axis concatenation of the head outputs.
        proj = jnp.zeros((seq, embed), jnp.float32)
        for h in range(num_heads):
            proj = proj + jnp.dot(o[h], wo_ref[h], preferred_element_type=jnp.float32)
        attn_rows.append(proj)
    attn = jnp.concatenate(attn_rows, axis=0) + bo_ref[...]  # (B*S, E), row concat
    # TODO(synk): dropout_1 / MLP dropouts are identity here (eval-mode semantics).

    # ---- residual + LayerNorm 1 ---------------------------------------------
    out1 = _layer_norm(x + attn, ln1_w_ref[...], ln1_b_ref[...])

    # ---- FFN: (Linear -> GELU -> Dropout) x 2  (dropouts identity) ----------
    h1 = _gelu_exact(jnp.dot(out1, w1_ref[...], preferred_element_type=jnp.float32)
                     + b1_ref[...])
    h2 = _gelu_exact(jnp.dot(h1, w2_ref[...], preferred_element_type=jnp.float32)
                     + b2_ref[...])

    # ---- residual + LayerNorm 2 ---------------------------------------------
    out = _layer_norm(out1 + h2, ln2_w_ref[...], ln2_b_ref[...])
    out_ref[...] = out.astype(out_ref.dtype)


def transformer_block(x, p, num_heads):
    """Pallas wrapper: single kernel invocation, batch folded into M = B*S.

    Host side does the one-time layout plumbing (weight transposes, per-head
    splits, scale folding); inside the kernel there are only 2D MXU matmuls,
    leading-axis-batched attention einsums and elementwise/LN ops.

    TODO(synk): for realistic E/FF, K-tile w1/w2 over an 'arbitrary' reduction
    grid axis with a VMEM accumulator and cast weights to bf16 (fp8 on v7x) so
    the working set fits v7x's 64 MiB VMEM; at this toy size all weights are
    < 50 KiB so they live whole in VMEM.
    NOTE: output last-dim is E=32 (< 128 lanes) only because of the toy shape;
    for real E >= 128 the output stores are naturally lane-dense.
    """
    B, S, E = x.shape
    assert E % num_heads == 0, "embed_dim must be divisible by num_heads"
    hd = E // num_heads
    scale = 1.0 / math.sqrt(hd)
    f32 = jnp.float32

    def split_heads_in(w, b, s=1.0):
        # torch Linear convention: y = x @ w.T + b, w is (out, in).
        w_h = (w * s).reshape(num_heads, hd, E).transpose(0, 2, 1)   # (H, E, hd)
        b_h = (b * s).reshape(num_heads, 1, hd)                      # (H, 1, hd)
        return w_h.astype(f32), b_h.astype(f32)

    wq_h, bq_h = split_heads_in(p["wq"], p["bq"], scale)  # scale folded into Q
    wk_h, bk_h = split_heads_in(p["wk"], p["bk"])
    wv_h, bv_h = split_heads_in(p["wv"], p["bv"])
    wo_h = p["wo"].T.reshape(num_heads, hd, E).astype(f32)           # (H, hd, E)

    row = lambda v: v.reshape(1, -1).astype(f32)

    args = [x.reshape(B * S, E),
            row(p["ln_in_w"]), row(p["ln_in_b"]),
            wq_h, bq_h, wk_h, bk_h, wv_h, bv_h,
            wo_h, row(p["bo"]),
            row(p["ln1_w"]), row(p["ln1_b"]),
            p["w1"].T.astype(f32), row(p["b1"]),     # (E, FF)
            p["w2"].T.astype(f32), row(p["b2"]),     # (FF, E)
            row(p["ln2_w"]), row(p["ln2_b"])]

    out2d = pl.pallas_call(
        functools.partial(transformer_block_kernel, num_heads, B, S),
        out_shape=jax.ShapeDtypeStruct((B * S, E), x.dtype),
        in_specs=[pl.BlockSpec(memory_space=pltpu.MemorySpace.VMEM) for _ in args],
        out_specs=pl.BlockSpec(memory_space=pltpu.MemorySpace.VMEM),
    )(*args)
    return out2d.reshape(B, S, E)


def transformer_block_ref(x, p, num_heads):
    """Pure-JAX reference (mirrors the PyTorch forward in eval mode)."""
    B, S, E = x.shape
    hd = E // num_heads
    scale = 1.0 / math.sqrt(hd)

    def ln(t, w, b):
        mu = jnp.mean(t, -1, keepdims=True)
        var = jnp.mean((t - mu) ** 2, -1, keepdims=True)
        return (t - mu) / jnp.sqrt(var + 1e-6) * w + b

    xn = ln(x, p["ln_in_w"], p["ln_in_b"])
    q = xn @ p["wq"].T + p["bq"]
    k = xn @ p["wk"].T + p["bk"]
    v = xn @ p["wv"].T + p["bv"]
    q = q.reshape(B, S, num_heads, hd).transpose(0, 2, 1, 3) * scale
    k = k.reshape(B, S, num_heads, hd).transpose(0, 2, 1, 3)
    v = v.reshape(B, S, num_heads, hd).transpose(0, 2, 1, 3)
    s = jnp.einsum("bhqd,bhkd->bhqk", q, k)
    pr = jax.nn.softmax(s, axis=-1)
    a = jnp.einsum("bhqk,bhkd->bhqd", pr, v).transpose(0, 2, 1, 3).reshape(B, S, E)
    a = a @ p["wo"].T + p["bo"]
    out1 = ln(x + a, p["ln1_w"], p["ln1_b"])
    h1 = jax.nn.gelu(out1 @ p["w1"].T + p["b1"], approximate=False)
    h2 = jax.nn.gelu(h1 @ p["w2"].T + p["b2"], approximate=False)
    return ln(out1 + h2, p["ln2_w"], p["ln2_b"])


if __name__ == "__main__":
    B, S, E, H, FF = 2, 8, 32, 4, 64  # batch, seq, embed_dim, num_heads, ff_dim
    key = jax.random.PRNGKey(0)
    ks = jax.random.split(key, 16)

    def init(k, shape, scale=0.05):
        return (scale * jax.random.normal(k, shape)).astype(jnp.float32)

    params = {
        "ln_in_w": jnp.ones((E,), jnp.float32), "ln_in_b": jnp.zeros((E,), jnp.float32),
        "wq": init(ks[0], (E, E)), "bq": init(ks[1], (E,)),
        "wk": init(ks[2], (E, E)), "bk": init(ks[3], (E,)),
        "wv": init(ks[4], (E, E)), "bv": init(ks[5], (E,)),
        "wo": init(ks[6], (E, E)), "bo": init(ks[7], (E,)),
        "ln1_w": jnp.ones((E,), jnp.float32), "ln1_b": jnp.zeros((E,), jnp.float32),
        "w1": init(ks[8], (FF, E)), "b1": init(ks[9], (FF,)),
        "w2": init(ks[10], (E, FF)), "b2": init(ks[11], (E,)),
        "ln2_w": jnp.ones((E,), jnp.float32), "ln2_b": jnp.zeros((E,), jnp.float32),
    }
    x = jax.random.normal(ks[12], (B, S, E), jnp.float32)

    out = transformer_block(x, params, H)
    jax.block_until_ready(out)
    assert out.shape == (B, S, E)

    ref = transformer_block_ref(x, params, H)
    # tolerance accommodates the EUP approximate-reciprocal softmax (~1e-4 level)
    assert jnp.allclose(out, ref, rtol=2e-3, atol=2e-3), "mismatch vs JAX reference"

    print("KERNEL_OK")
</pallas_src>

<mosaic_0001>
module attributes {stable_mosaic.version = 11 : i64} {
  func.func @transformer_block_kernel(%arg0: memref<16x32xf32, #tpu.memory_space<vmem>>, %arg1: memref<1x32xf32, #tpu.memory_space<vmem>>, %arg2: memref<1x32xf32, #tpu.memory_space<vmem>>, %arg3: memref<4x32x8xf32, #tpu.memory_space<vmem>>, %arg4: memref<4x1x8xf32, #tpu.memory_space<vmem>>, %arg5: memref<4x32x8xf32, #tpu.memory_space<vmem>>, %arg6: memref<4x1x8xf32, #tpu.memory_space<vmem>>, %arg7: memref<4x32x8xf32, #tpu.memory_space<vmem>>, %arg8: memref<4x1x8xf32, #tpu.memory_space<vmem>>, %arg9: memref<4x8x32xf32, #tpu.memory_space<vmem>>, %arg10: memref<1x32xf32, #tpu.memory_space<vmem>>, %arg11: memref<1x32xf32, #tpu.memory_space<vmem>>, %arg12: memref<1x32xf32, #tpu.memory_space<vmem>>, %arg13: memref<32x64xf32, #tpu.memory_space<vmem>>, %arg14: memref<1x64xf32, #tpu.memory_space<vmem>>, %arg15: memref<64x32xf32, #tpu.memory_space<vmem>>, %arg16: memref<1x32xf32, #tpu.memory_space<vmem>>, %arg17: memref<1x32xf32, #tpu.memory_space<vmem>>, %arg18: memref<1x32xf32, #tpu.memory_space<vmem>>, %arg19: memref<16x32xf32, #tpu.memory_space<vmem>>) attributes {dimension_semantics = [], scalar_prefetch = 0 : i64, scratch_operands = 0 : i64, tpu.core_type = #tpu.core_type<tc>} {
    %c0 = arith.constant 0 : index
    %c0_0 = arith.constant 0 : index
    %0 = vector.load %arg0[%c0, %c0_0] : memref<16x32xf32, #tpu.memory_space<vmem>>, vector<16x32xf32>
    %c0_1 = arith.constant 0 : index
    %c0_2 = arith.constant 0 : index
    %1 = vector.load %arg1[%c0_1, %c0_2] : memref<1x32xf32, #tpu.memory_space<vmem>>, vector<1x32xf32>
    %c0_3 = arith.constant 0 : index
    %c0_4 = arith.constant 0 : index
    %2 = vector.load %arg2[%c0_3, %c0_4] : memref<1x32xf32, #tpu.memory_space<vmem>>, vector<1x32xf32>
    %cst = arith.constant dense<0.000000e+00> : vector<16xf32>
    %3 = vector.multi_reduction <add>, %0, %cst [1] : vector<16x32xf32> to vector<16xf32>
    %4 = vector.shape_cast %3 : vector<16xf32> to vector<16x1xf32>
    %cst_5 = arith.constant 3.200000e+01 : f32
    %5 = vector.broadcast %cst_5 : f32 to vector<16x1xf32>
    %6 = arith.divf %4, %5 : vector<16x1xf32>
    %7 = vector.broadcast %6 : vector<16x1xf32> to vector<16x32xf32>
    %8 = arith.subf %0, %7 : vector<16x32xf32>
    %9 = arith.mulf %8, %8 : vector<16x32xf32>
    %cst_6 = arith.constant dense<0.000000e+00> : vector<16xf32>
    %10 = vector.multi_reduction <add>, %9, %cst_6 [1] : vector<16x32xf32> to vector<16xf32>
    %11 = vector.shape_cast %10 : vector<16xf32> to vector<16x1xf32>
    %cst_7 = arith.constant 3.200000e+01 : f32
    %12 = vector.broadcast %cst_7 : f32 to vector<16x1xf32>
    %13 = arith.divf %11, %12 : vector<16x1xf32>
    %cst_8 = arith.constant 9.99999997E-7 : f32
    %14 = vector.broadcast %cst_8 : f32 to vector<16x1xf32>
    %15 = arith.addf %13, %14 : vector<16x1xf32>
    %16 = math.rsqrt %15 : vector<16x1xf32>
    %17 = vector.broadcast %16 : vector<16x1xf32> to vector<16x32xf32>
    %18 = arith.mulf %8, %17 : vector<16x32xf32>
    %19 = vector.broadcast %1 : vector<1x32xf32> to vector<16x32xf32>
    %20 = arith.mulf %18, %19 : vector<16x32xf32>
    %21 = vector.broadcast %2 : vector<1x32xf32> to vector<16x32xf32>
    %22 = arith.addf %20, %21 : vector<16x32xf32>
    %c0_9 = arith.constant 0 : index
    %c0_10 = arith.constant 0 : index
    %c0_11 = arith.constant 0 : index
    %23 = vector.load %arg3[%c0_9, %c0_10, %c0_11] : memref<4x32x8xf32, #tpu.memory_space<vmem>>, vector<1x32x8xf32>
    %24 = vector.shape_cast %23 : vector<1x32x8xf32> to vector<32x8xf32>
    %cst_12 = arith.constant dense<0.000000e+00> : vector<16x8xf32>
    %25 = tpu.matmul %22, %24, %cst_12 {dimension_numbers = #tpu.dot_dimension_numbers<[1], [0], [0], [1], [0, 0, 1, 1], [], []>} : vector<16x32xf32>, vector<32x8xf32>, vector<16x8xf32> -> vector<16x8xf32>
    %c0_13 = arith.constant 0 : index
    %c0_14 = arith.constant 0 : index
    %c0_15 = arith.constant 0 : index
    %26 = vector.load %arg4[%c0_13, %c0_14, %c0_15] : memref<4x1x8xf32, #tpu.memory_space<vmem>>, vector<1x1x8xf32>
    %27 = vector.shape_cast %26 : vector<1x1x8xf32> to vector<1x8xf32>
    %28 = vector.broadcast %27 : vector<1x8xf32> to vector<16x8xf32>
    %29 = arith.addf %25, %28 : vector<16x8xf32>
    %c1 = arith.constant 1 : index
    %c0_16 = arith.constant 0 : index
    %c0_17 = arith.constant 0 : index
    %30 = vector.load %arg3[%c1, %c0_16, %c0_17] : memref<4x32x8xf32, #tpu.memory_space<vmem>>, vector<1x32x8xf32>
    %31 = vector.shape_cast %30 : vector<1x32x8xf32> to vector<32x8xf32>
    %cst_18 = arith.constant dense<0.000000e+00> : vector<16x8xf32>
    %32 = tpu.matmul %22, %31, %cst_18 {dimension_numbers = #tpu.dot_dimension_numbers<[1], [0], [0], [1], [0, 0, 1, 1], [], []>} : vector<16x32xf32>, vector<32x8xf32>, vector<16x8xf32> -> vector<16x8xf32>
    %c1_19 = arith.constant 1 : index
    %c0_20 = arith.constant 0 : index
    %c0_21 = arith.constant 0 : index
    %33 = vector.load %arg4[%c1_19, %c0_20, %c0_21] : memref<4x1x8xf32, #tpu.memory_space<vmem>>, vector<1x1x8xf32>
    %34 = vector.shape_cast %33 : vector<1x1x8xf32> to vector<1x8xf32>
    %35 = vector.broadcast %34 : vector<1x8xf32> to vector<16x8xf32>
    %36 = arith.addf %32, %35 : vector<16x8xf32>
    %c2 = arith.constant 2 : index
    %c0_22 = arith.constant 0 : index
    %c0_23 = arith.constant 0 : index
    %37 = vector.load %arg3[%c2, %c0_22, %c0_23] : memref<4x32x8xf32, #tpu.memory_space<vmem>>, vector<1x32x8xf32>
    %38 = vector.shape_cast %37 : vector<1x32x8xf32> to vector<32x8xf32>
    %cst_24 = arith.constant dense<0.000000e+00> : vector<16x8xf32>
    %39 = tpu.matmul %22, %38, %cst_24 {dimension_numbers = #tpu.dot_dimension_numbers<[1], [0], [0], [1], [0, 0, 1, 1], [], []>} : vector<16x32xf32>, vector<32x8xf32>, vector<16x8xf32> -> vector<16x8xf32>
    %c2_25 = arith.constant 2 : index
    %c0_26 = arith.constant 0 : index
    %c0_27 = arith.constant 0 : index
    %40 = vector.load %arg4[%c2_25, %c0_26, %c0_27] : memref<4x1x8xf32, #tpu.memory_space<vmem>>, vector<1x1x8xf32>
    %41 = vector.shape_cast %40 : vector<1x1x8xf32> to vector<1x8xf32>
    %42 = vector.broadcast %41 : vector<1x8xf32> to vector<16x8xf32>
    %43 = arith.addf %39, %42 : vector<16x8xf32>
    %c3 = arith.constant 3 : index
    %c0_28 = arith.constant 0 : index
    %c0_29 = arith.constant 0 : index
    %44 = vector.load %arg3[%c3, %c0_28, %c0_29] : memref<4x32x8xf32, #tpu.memory_space<vmem>>, vector<1x32x8xf32>
    %45 = vector.shape_cast %44 : vector<1x32x8xf32> to vector<32x8xf32>
    %cst_30 = arith.constant dense<0.000000e+00> : vector<16x8xf32>
    %46 = tpu.matmul %22, %45, %cst_30 {dimension_numbers = #tpu.dot_dimension_numbers<[1], [0], [0], [1], [0, 0, 1, 1], [], []>} : vector<16x32xf32>, vector<32x8xf32>, vector<16x8xf32> -> vector<16x8xf32>
    %c3_31 = arith.constant 3 : index
    %c0_32 = arith.constant 0 : index
    %c0_33 = arith.constant 0 : index
    %47 = vector.load %arg4[%c3_31, %c0_32, %c0_33] : memref<4x1x8xf32, #tpu.memory_space<vmem>>, vector<1x1x8xf32>
    %48 = vector.shape_cast %47 : vector<1x1x8xf32> to vector<1x8xf32>
    %49 = vector.broadcast %48 : vector<1x8xf32> to vector<16x8xf32>
    %50 = arith.addf %46, %49 : vector<16x8xf32>
    %c0_34 = arith.constant 0 : index
    %c0_35 = arith.constant 0 : index
    %c0_36 = arith.constant 0 : index
    %51 = vector.load %arg5[%c0_34, %c0_35, %c0_36] : memref<4x32x8xf32, #tpu.memory_space<vmem>>, vector<1x32x8xf32>
    %52 = vector.shape_cast %51 : vector<1x32x8xf32> to vector<32x8xf32>
    %cst_37 = arith.constant dense<0.000000e+00> : vector<16x8xf32>
    %53 = tpu.matmul %22, %52, %cst_37 {dimension_numbers = #tpu.dot_dimension_numbers<[1], [0], [0], [1], [0, 0, 1, 1], [], []>} : vector<16x32xf32>, vector<32x8xf32>, vector<16x8xf32> -> vector<16x8xf32>
    %c0_38 = arith.constant 0 : index
    %c0_39 = arith.constant 0 : index
    %c0_40 = arith.constant 0 : index
    %54 = vector.load %arg6[%c0_38, %c0_39, %c0_40] : memref<4x1x8xf32, #tpu.memory_space<vmem>>, vector<1x1x8xf32>
    %55 = vector.shape_cast %54 : vector<1x1x8xf32> to vector<1x8xf32>
    %56 = vector.broadcast %55 : vector<1x8xf32> to vector<16x8xf32>
    %57 = arith.addf %53, %56 : vector<16x8xf32>
    %c1_41 = arith.constant 1 : index
    %c0_42 = arith.constant 0 : index
    %c0_43 = arith.constant 0 : index
    %58 = vector.load %arg5[%c1_41, %c0_42, %c0_43] : memref<4x32x8xf32, #tpu.memory_space<vmem>>, vector<1x32x8xf32>
    %59 = vector.shape_cast %58 : vector<1x32x8xf32> to vector<32x8xf32>
    %cst_44 = arith.constant dense<0.000000e+00> : vector<16x8xf32>
    %60 = tpu.matmul %22, %59, %cst_44 {dimension_numbers = #tpu.dot_dimension_numbers<[1], [0], [0], [1], [0, 0, 1, 1], [], []>} : vector<16x32xf32>, vector<32x8xf32>, vector<16x8xf32> -> vector<16x8xf32>
    %c1_45 = arith.constant 1 : index
    %c0_46 = arith.constant 0 : index
    %c0_47 = arith.constant 0 : index
    %61 = vector.load %arg6[%c1_45, %c0_46, %c0_47] : memref<4x1x8xf32, #tpu.memory_space<vmem>>, vector<1x1x8xf32>
    %62 = vector.shape_cast %61 : vector<1x1x8xf32> to vector<1x8xf32>
    %63 = vector.broadcast %62 : vector<1x8xf32> to vector<16x8xf32>
    %64 = arith.addf %60, %63 : vector<16x8xf32>
    %c2_48 = arith.constant 2 : index
    %c0_49 = arith.constant 0 : index
    %c0_50 = arith.constant 0 : index
    %65 = vector.load %arg5[%c2_48, %c0_49, %c0_50] : memref<4x32x8xf32, #tpu.memory_space<vmem>>, vector<1x32x8xf32>
    %66 = vector.shape_cast %65 : vector<1x32x8xf32> to vector<32x8xf32>
    %cst_51 = arith.constant dense<0.000000e+00> : vector<16x8xf32>
    %67 = tpu.matmul %22, %66, %cst_51 {dimension_numbers = #tpu.dot_dimension_numbers<[1], [0], [0], [1], [0, 0, 1, 1], [], []>} : vector<16x32xf32>, vector<32x8xf32>, vector<16x8xf32> -> vector<16x8xf32>
    %c2_52 = arith.constant 2 : index
    %c0_53 = arith.constant 0 : index
    %c0_54 = arith.constant 0 : index
    %68 = vector.load %arg6[%c2_52, %c0_53, %c0_54] : memref<4x1x8xf32, #tpu.memory_space<vmem>>, vector<1x1x8xf32>
    %69 = vector.shape_cast %68 : vector<1x1x8xf32> to vector<1x8xf32>
    %70 = vector.broadcast %69 : vector<1x8xf32> to vector<16x8xf32>
    %71 = arith.addf %67, %70 : vector<16x8xf32>
    %c3_55 = arith.constant 3 : index
    %c0_56 = arith.constant 0 : index
    %c0_57 = arith.constant 0 : index
    %72 = vector.load %arg5[%c3_55, %c0_56, %c0_57] : memref<4x32x8xf32, #tpu.memory_space<vmem>>, vector<1x32x8xf32>
    %73 = vector.shape_cast %72 : vector<1x32x8xf32> to vector<32x8xf32>
    %cst_58 = arith.constant dense<0.000000e+00> : vector<16x8xf32>
    %74 = tpu.matmul %22, %73, %cst_58 {dimension_numbers = #tpu.dot_dimension_numbers<[1], [0], [0], [1], [0, 0, 1, 1], [], []>} : vector<16x32xf32>, vector<32x8xf32>, vector<16x8xf32> -> vector<16x8xf32>
    %c3_59 = arith.constant 3 : index
    %c0_60 = arith.constant 0 : index
    %c0_61 = arith.constant 0 : index
    %75 = vector.load %arg6[%c3_59, %c0_60, %c0_61] : memref<4x1x8xf32, #tpu.memory_space<vmem>>, vector<1x1x8xf32>
    %76 = vector.shape_cast %75 : vector<1x1x8xf32> to vector<1x8xf32>
    %77 = vector.broadcast %76 : vector<1x8xf32> to vector<16x8xf32>
    %78 = arith.addf %74, %77 : vector<16x8xf32>
    %c0_62 = arith.constant 0 : index
    %c0_63 = arith.constant 0 : index
    %c0_64 = arith.constant 0 : index
    %79 = vector.load %arg7[%c0_62, %c0_63, %c0_64] : memref<4x32x8xf32, #tpu.memory_space<vmem>>, vector<1x32x8xf32>
    %80 = vector.shape_cast %79 : vector<1x32x8xf32> to vector<32x8xf32>
    %cst_65 = arith.constant dense<0.000000e+00> : vector<16x8xf32>
    %81 = tpu.matmul %22, %80, %cst_65 {dimension_numbers = #tpu.dot_dimension_numbers<[1], [0], [0], [1], [0, 0, 1, 1], [], []>} : vector<16x32xf32>, vector<32x8xf32>, vector<16x8xf32> -> vector<16x8xf32>
    %c0_66 = arith.constant 0 : index
    %c0_67 = arith.constant 0 : index
    %c0_68 = arith.constant 0 : index
    %82 = vector.load %arg8[%c0_66, %c0_67, %c0_68] : memref<4x1x8xf32, #tpu.memory_space<vmem>>, vector<1x1x8xf32>
    %83 = vector.shape_cast %82 : vector<1x1x8xf32> to vector<1x8xf32>
    %84 = vector.broadcast %83 : vector<1x8xf32> to vector<16x8xf32>
    %85 = arith.addf %81, %84 : vector<16x8xf32>
    %c1_69 = arith.constant 1 : index
    %c0_70 = arith.constant 0 : index
    %c0_71 = arith.constant 0 : index
    %86 = vector.load %arg7[%c1_69, %c0_70, %c0_71] : memref<4x32x8xf32, #tpu.memory_space<vmem>>, vector<1x32x8xf32>
    %87 = vector.shape_cast %86 : vector<1x32x8xf32> to vector<32x8xf32>
    %cst_72 = arith.constant dense<0.000000e+00> : vector<16x8xf32>
    %88 = tpu.matmul %22, %87, %cst_72 {dimension_numbers = #tpu.dot_dimension_numbers<[1], [0], [0], [1], [0, 0, 1, 1], [], []>} : vector<16x32xf32>, vector<32x8xf32>, vector<16x8xf32> -> vector<16x8xf32>
    %c1_73 = arith.constant 1 : index
    %c0_74 = arith.constant 0 : index
    %c0_75 = arith.constant 0 : index
    %89 = vector.load %arg8[%c1_73, %c0_74, %c0_75] : memref<4x1x8xf32, #tpu.memory_space<vmem>>, vector<1x1x8xf32>
    %90 = vector.shape_cast %89 : vector<1x1x8xf32> to vector<1x8xf32>
    %91 = vector.broadcast %90 : vector<1x8xf32> to vector<16x8xf32>
    %92 = arith.addf %88, %91 : vector<16x8xf32>
    %c2_76 = arith.constant 2 : index
    %c0_77 = arith.constant 0 : index
    %c0_78 = arith.constant 0 : index
    %93 = vector.load %arg7[%c2_76, %c0_77, %c0_78] : memref<4x32x8xf32, #tpu.memory_space<vmem>>, vector<1x32x8xf32>
    %94 = vector.shape_cast %93 : vector<1x32x8xf32> to vector<32x8xf32>
    %cst_79 = arith.constant dense<0.000000e+00> : vector<16x8xf32>
    %95 = tpu.matmul %22, %94, %cst_79 {dimension_numbers = #tpu.dot_dimension_numbers<[1], [0], [0], [1], [0, 0, 1, 1], [], []>} : vector<16x32xf32>, vector<32x8xf32>, vector<16x8xf32> -> vector<16x8xf32>
    %c2_80 = arith.constant 2 : index
    %c0_81 = arith.constant 0 : index
    %c0_82 = arith.constant 0 : index
    %96 = vector.load %arg8[%c2_80, %c0_81, %c0_82] : memref<4x1x8xf32, #tpu.memory_space<vmem>>, vector<1x1x8xf32>
    %97 = vector.shape_cast %96 : vector<1x1x8xf32> to vector<1x8xf32>
    %98 = vector.broadcast %97 : vector<1x8xf32> to vector<16x8xf32>
    %99 = arith.addf %95, %98 : vector<16x8xf32>
    %c3_83 = arith.constant 3 : index
    %c0_84 = arith.constant 0 : index
    %c0_85 = arith.constant 0 : index
    %100 = vector.load %arg7[%c3_83, %c0_84, %c0_85] : memref<4x32x8xf32, #tpu.memory_space<vmem>>, vector<1x32x8xf32>
    %101 = vector.shape_cast %100 : vector<1x32x8xf32> to vector<32x8xf32>
    %cst_86 = arith.constant dense<0.000000e+00> : vector<16x8xf32>
    %102 = tpu.matmul %22, %101, %cst_86 {dimension_numbers = #tpu.dot_dimension_numbers<[1], [0], [0], [1], [0, 0, 1, 1], [], []>} : vector<16x32xf32>, vector<32x8xf32>, vector<16x8xf32> -> vector<16x8xf32>
    %c3_87 = arith.constant 3 : index
    %c0_88 = arith.constant 0 : index
    %c0_89 = arith.constant 0 : index
    %103 = vector.load %arg8[%c3_87, %c0_88, %c0_89] : memref<4x1x8xf32, #tpu.memory_space<vmem>>, vector<1x1x8xf32>
    %104 = vector.shape_cast %103 : vector<1x1x8xf32> to vector<1x8xf32>
    %105 = vector.broadcast %104 : vector<1x8xf32> to vector<16x8xf32>
    %106 = arith.addf %102, %105 : vector<16x8xf32>
    %107 = vector.extract_strided_slice %29 {offsets = [0, 0], sizes = [8, 8], strides = [1, 1]} : vector<16x8xf32> to vector<8x8xf32>
    %108 = vector.extract_strided_slice %36 {offsets = [0, 0], sizes = [8, 8], strides = [1, 1]} : vector<16x8xf32> to vector<8x8xf32>
    %109 = vector.extract_strided_slice %43 {offsets = [0, 0], sizes = [8, 8], strides = [1, 1]} : vector<16x8xf32> to vector<8x8xf32>
    %110 = vector.extract_strided_slice %50 {offsets = [0, 0], sizes = [8, 8], strides = [1, 1]} : vector<16x8xf32> to vector<8x8xf32>
    %111 = vector.shape_cast %107 : vector<8x8xf32> to vector<1x8x8xf32>
    %112 = vector.shape_cast %108 : vector<8x8xf32> to vector<1x8x8xf32>
    %113 = vector.shape_cast %109 : vector<8x8xf32> to vector<1x8x8xf32>
    %114 = vector.shape_cast %110 : vector<8x8xf32> to vector<1x8x8xf32>
    %115 = tpu.concatenate %111, %112, %113, %114 in 0 : vector<1x8x8xf32>, vector<1x8x8xf32>, vector<1x8x8xf32>, vector<1x8x8xf32> -> vector<4x8x8xf32>
    %116 = vector.extract_strided_slice %57 {offsets = [0, 0], sizes = [8, 8], strides = [1, 1]} : vector<16x8xf32> to vector<8x8xf32>
    %117 = vector.extract_strided_slice %64 {offsets = [0, 0], sizes = [8, 8], strides = [1, 1]} : vector<16x8xf32> to vector<8x8xf32>
    %118 = vector.extract_strided_slice %71 {offsets = [0, 0], sizes = [8, 8], strides = [1, 1]} : vector<16x8xf32> to vector<8x8xf32>
    %119 = vector.extract_strided_slice %78 {offsets = [0, 0], sizes = [8, 8], strides = [1, 1]} : vector<16x8xf32> to vector<8x8xf32>
    %120 = vector.shape_cast %116 : vector<8x8xf32> to vector<1x8x8xf32>
    %121 = vector.shape_cast %117 : vector<8x8xf32> to vector<1x8x8xf32>
    %122 = vector.shape_cast %118 : vector<8x8xf32> to vector<1x8x8xf32>
    %123 = vector.shape_cast %119 : vector<8x8xf32> to vector<1x8x8xf32>
    %124 = tpu.concatenate %120, %121, %122, %123 in 0 : vector<1x8x8xf32>, vector<1x8x8xf32>, vector<1x8x8xf32>, vector<1x8x8xf32> -> vector<4x8x8xf32>
    %125 = vector.extract_strided_slice %85 {offsets = [0, 0], sizes = [8, 8], strides = [1, 1]} : vector<16x8xf32> to vector<8x8xf32>
    %126 = vector.extract_strided_slice %92 {offsets = [0, 0], sizes = [8, 8], strides = [1, 1]} : vector<16x8xf32> to vector<8x8xf32>
    %127 = vector.extract_strided_slice %99 {offsets = [0, 0], sizes = [8, 8], strides = [1, 1]} : vector<16x8xf32> to vector<8x8xf32>
    %128 = vector.extract_strided_slice %106 {offsets = [0, 0], sizes = [8, 8], strides = [1, 1]} : vector<16x8xf32> to vector<8x8xf32>
    %129 = vector.shape_cast %125 : vector<8x8xf32> to vector<1x8x8xf32>
    %130 = vector.shape_cast %126 : vector<8x8xf32> to vector<1x8x8xf32>
    %131 = vector.shape_cast %127 : vector<8x8xf32> to vector<1x8x8xf32>
    %132 = vector.shape_cast %128 : vector<8x8xf32> to vector<1x8x8xf32>
    %133 = tpu.concatenate %129, %130, %131, %132 in 0 : vector<1x8x8xf32>, vector<1x8x8xf32>, vector<1x8x8xf32>, vector<1x8x8xf32> -> vector<4x8x8xf32>
    "tpu.trace_start"() <{level = 10 : i32, message = "hqd,hkd->hqk"}> : () -> ()
    %cst_90 = arith.constant dense<0.000000e+00> : vector<4x8x8xf32>
    %134 = tpu.matmul %115, %124, %cst_90 {dimension_numbers = #tpu.dot_dimension_numbers<[2], [2], [1], [1], [0, 0, 0, 1, 1, 1], [0], [0]>} : vector<4x8x8xf32>, vector<4x8x8xf32>, vector<4x8x8xf32> -> vector<4x8x8xf32>
    "tpu.trace_stop"() : () -> ()
    %cst_91 = arith.constant dense<0xFF800000> : vector<4x8xf32>
    %135 = vector.multi_reduction <maximumf>, %134, %cst_91 [2] : vector<4x8x8xf32> to vector<4x8xf32>
    %136 = vector.shape_cast %135 : vector<4x8xf32> to vector<4x8x1xf32>
    %137 = vector.broadcast %136 : vector<4x8x1xf32> to vector<4x8x8xf32>
    %138 = arith.subf %134, %137 : vector<4x8x8xf32>
    %139 = math.exp %138 : vector<4x8x8xf32>
    %cst_92 = arith.constant dense<0.000000e+00> : vector<4x8xf32>
    %140 = vector.multi_reduction <add>, %139, %cst_92 [2] : vector<4x8x8xf32> to vector<4x8xf32>
    %141 = vector.shape_cast %140 : vector<4x8xf32> to vector<4x8x1xf32>
    %142 = tpu.reciprocal %141 {approx = true} : vector<4x8x1xf32> -> vector<4x8x1xf32>
    %143 = vector.broadcast %142 : vector<4x8x1xf32> to vector<4x8x8xf32>
    %144 = arith.mulf %139, %143 : vector<4x8x8xf32>
    "tpu.trace_start"() <{level = 10 : i32, message = "hqk,hkd->hqd"}> : () -> ()
    %cst_93 = arith.constant dense<0.000000e+00> : vector<4x8x8xf32>
    %145 = tpu.matmul %144, %133, %cst_93 {dimension_numbers = #tpu.dot_dimension_numbers<[2], [1], [1], [2], [0, 0, 0, 1, 1, 2], [0], [0]>} : vector<4x8x8xf32>, vector<4x8x8xf32>, vector<4x8x8xf32> -> vector<4x8x8xf32>
    %cst_94 = arith.constant 0.000000e+00 : f32
    "tpu.trace_stop"() : () -> ()
    %146 = vector.broadcast %cst_94 : f32 to vector<8x32xf32>
    %147 = vector.extract_strided_slice %145 {offsets = [0, 0, 0], sizes = [1, 8, 8], strides = [1, 1, 1]} : vector<4x8x8xf32> to vector<1x8x8xf32>
    %148 = vector.shape_cast %147 : vector<1x8x8xf32> to vector<8x8xf32>
    %c0_95 = arith.constant 0 : index
    %c0_96 = arith.constant 0 : index
    %c0_97 = arith.constant 0 : index
    %149 = vector.load %arg9[%c0_95, %c0_96, %c0_97] : memref<4x8x32xf32, #tpu.memory_space<vmem>>, vector<1x8x32xf32>
    %150 = vector.shape_cast %149 : vector<1x8x32xf32> to vector<8x32xf32>
    %cst_98 = arith.constant dense<0.000000e+00> : vector<8x32xf32>
    %151 = tpu.matmul %148, %150, %cst_98 {dimension_numbers = #tpu.dot_dimension_numbers<[1], [0], [0], [1], [0, 0, 1, 1], [], []>} : vector<8x8xf32>, vector<8x32xf32>, vector<8x32xf32> -> vector<8x32xf32>
    %152 = arith.addf %146, %151 : vector<8x32xf32>
    %153 = vector.extract_strided_slice %145 {offsets = [1, 0, 0], sizes = [1, 8, 8], strides = [1, 1, 1]} : vector<4x8x8xf32> to vector<1x8x8xf32>
    %154 = vector.shape_cast %153 : vector<1x8x8xf32> to vector<8x8xf32>
    %c1_99 = arith.constant 1 : index
    %c0_100 = arith.constant 0 : index
    %c0_101 = arith.constant 0 : index
    %155 = vector.load %arg9[%c1_99, %c0_100, %c0_101] : memref<4x8x32xf32, #tpu.memory_space<vmem>>, vector<1x8x32xf32>
    %156 = vector.shape_cast %155 : vector<1x8x32xf32> to vector<8x32xf32>
    %cst_102 = arith.constant dense<0.000000e+00> : vector<8x32xf32>
    %157 = tpu.matmul %154, %156, %cst_102 {dimension_numbers = #tpu.dot_dimension_numbers<[1], [0], [0], [1], [0, 0, 1, 1], [], []>} : vector<8x8xf32>, vector<8x32xf32>, vector<8x32xf32> -> vector<8x32xf32>
    %158 = arith.addf %152, %157 : vector<8x32xf32>
    %159 = vector.extract_strided_slice %145 {offsets = [2, 0, 0], sizes = [1, 8, 8], strides = [1, 1, 1]} : vector<4x8x8xf32> to vector<1x8x8xf32>
    %160 = vector.shape_cast %159 : vector<1x8x8xf32> to vector<8x8xf32>
    %c2_103 = arith.constant 2 : index
    %c0_104 = arith.constant 0 : index
    %c0_105 = arith.constant 0 : index
    %161 = vector.load %arg9[%c2_103, %c0_104, %c0_105] : memref<4x8x32xf32, #tpu.memory_space<vmem>>, vector<1x8x32xf32>
    %162 = vector.shape_cast %161 : vector<1x8x32xf32> to vector<8x32xf32>
    %cst_106 = arith.constant dense<0.000000e+00> : vector<8x32xf32>
    %163 = tpu.matmul %160, %162, %cst_106 {dimension_numbers = #tpu.dot_dimension_numbers<[1], [0], [0], [1], [0, 0, 1, 1], [], []>} : vector<8x8xf32>, vector<8x32xf32>, vector<8x32xf32> -> vector<8x32xf32>
    %164 = arith.addf %158, %163 : vector<8x32xf32>
    %165 = vector.extract_strided_slice %145 {offsets = [3, 0, 0], sizes = [1, 8, 8], strides = [1, 1, 1]} : vector<4x8x8xf32> to vector<1x8x8xf32>
    %166 = vector.shape_cast %165 : vector<1x8x8xf32> to vector<8x8xf32>
    %c3_107 = arith.constant 3 : index
    %c0_108 = arith.constant 0 : index
    %c0_109 = arith.constant 0 : index
    %167 = vector.load %arg9[%c3_107, %c0_108, %c0_109] : memref<4x8x32xf32, #tpu.memory_space<vmem>>, vector<1x8x32xf32>
    %168 = vector.shape_cast %167 : vector<1x8x32xf32> to vector<8x32xf32>
    %cst_110 = arith.constant dense<0.000000e+00> : vector<8x32xf32>
    %169 = tpu.matmul %166, %168, %cst_110 {dimension_numbers = #tpu.dot_dimension_numbers<[1], [0], [0], [1], [0, 0, 1, 1], [], []>} : vector<8x8xf32>, vector<8x32xf32>, vector<8x32xf32> -> vector<8x32xf32>
    %170 = arith.addf %164, %169 : vector<8x32xf32>
    %171 = vector.extract_strided_slice %29 {offsets = [8, 0], sizes = [8, 8], strides = [1, 1]} : vector<16x8xf32> to vector<8x8xf32>
    %172 = vector.extract_strided_slice %36 {offsets = [8, 0], sizes = [8, 8], strides = [1, 1]} : vector<16x8xf32> to vector<8x8xf32>
    %173 = vector.extract_strided_slice %43 {offsets = [8, 0], sizes = [8, 8], strides = [1, 1]} : vector<16x8xf32> to vector<8x8xf32>
    %174 = vector.extract_strided_slice %50 {offsets = [8, 0], sizes = [8, 8], strides = [1, 1]} : vector<16x8xf32> to vector<8x8xf32>
    %175 = vector.shape_cast %171 : vector<8x8xf32> to vector<1x8x8xf32>
    %176 = vector.shape_cast %172 : vector<8x8xf32> to vector<1x8x8xf32>
    %177 = vector.shape_cast %173 : vector<8x8xf32> to vector<1x8x8xf32>
    %178 = vector.shape_cast %174 : vector<8x8xf32> to vector<1x8x8xf32>
    %179 = tpu.concatenate %175, %176, %177, %178 in 0 : vector<1x8x8xf32>, vector<1x8x8xf32>, vector<1x8x8xf32>, vector<1x8x8xf32> -> vector<4x8x8xf32>
    %180 = vector.extract_strided_slice %57 {offsets = [8, 0], sizes = [8, 8], strides = [1, 1]} : vector<16x8xf32> to vector<8x8xf32>
    %181 = vector.extract_strided_slice %64 {offsets = [8, 0], sizes = [8, 8], strides = [1, 1]} : vector<16x8xf32> to vector<8x8xf32>
    %182 = vector.extract_strided_slice %71 {offsets = [8, 0], sizes = [8, 8], strides = [1, 1]} : vector<16x8xf32> to vector<8x8xf32>
    %183 = vector.extract_strided_slice %78 {offsets = [8, 0], sizes = [8, 8], strides = [1, 1]} : vector<16x8xf32> to vector<8x8xf32>
    %184 = vector.shape_cast %180 : vector<8x8xf32> to vector<1x8x8xf32>
    %185 = vector.shape_cast %181 : vector<8x8xf32> to vector<1x8x8xf32>
    %186 = vector.shape_cast %182 : vector<8x8xf32> to vector<1x8x8xf32>
    %187 = vector.shape_cast %183 : vector<8x8xf32> to vector<1x8x8xf32>
    %188 = tpu.concatenate %184, %185, %186, %187 in 0 : vector<1x8x8xf32>, vector<1x8x8xf32>, vector<1x8x8xf32>, vector<1x8x8xf32> -> vector<4x8x8xf32>
    %189 = vector.extract_strided_slice %85 {offsets = [8, 0], sizes = [8, 8], strides = [1, 1]} : vector<16x8xf32> to vector<8x8xf32>
    %190 = vector.extract_strided_slice %92 {offsets = [8, 0], sizes = [8, 8], strides = [1, 1]} : vector<16x8xf32> to vector<8x8xf32>
    %191 = vector.extract_strided_slice %99 {offsets = [8, 0], sizes = [8, 8], strides = [1, 1]} : vector<16x8xf32> to vector<8x8xf32>
    %192 = vector.extract_strided_slice %106 {offsets = [8, 0], sizes = [8, 8], strides = [1, 1]} : vector<16x8xf32> to vector<8x8xf32>
    %193 = vector.shape_cast %189 : vector<8x8xf32> to vector<1x8x8xf32>
    %194 = vector.shape_cast %190 : vector<8x8xf32> to vector<1x8x8xf32>
    %195 = vector.shape_cast %191 : vector<8x8xf32> to vector<1x8x8xf32>
    %196 = vector.shape_cast %192 : vector<8x8xf32> to vector<1x8x8xf32>
    %197 = tpu.concatenate %193, %194, %195, %196 in 0 : vector<1x8x8xf32>, vector<1x8x8xf32>, vector<1x8x8xf32>, vector<1x8x8xf32> -> vector<4x8x8xf32>
    "tpu.trace_start"() <{level = 10 : i32, message = "hqd,hkd->hqk"}> : () -> ()
    %cst_111 = arith.constant dense<0.000000e+00> : vector<4x8x8xf32>
    %198 = tpu.matmul %179, %188, %cst_111 {dimension_numbers = #tpu.dot_dimension_numbers<[2], [2], [1], [1], [0, 0, 0, 1, 1, 1], [0], [0]>} : vector<4x8x8xf32>, vector<4x8x8xf32>, vector<4x8x8xf32> -> vector<4x8x8xf32>
    "tpu.trace_stop"() : () -> ()
    %cst_112 = arith.constant dense<0xFF800000> : vector<4x8xf32>
    %199 = vector.multi_reduction <maximumf>, %198, %cst_112 [2] : vector<4x8x8xf32> to vector<4x8xf32>
    %200 = vector.shape_cast %199 : vector<4x8xf32> to vector<4x8x1xf32>
    %201 = vector.broadcast %200 : vector<4x8x1xf32> to vector<4x8x8xf32>
    %202 = arith.subf %198, %201 : vector<4x8x8xf32>
    %203 = math.exp %202 : vector<4x8x8xf32>
    %cst_113 = arith.constant dense<0.000000e+00> : vector<4x8xf32>
    %204 = vector.multi_reduction <add>, %203, %cst_113 [2] : vector<4x8x8xf32> to vector<4x8xf32>
    %205 = vector.shape_cast %204 : vector<4x8xf32> to vector<4x8x1xf32>
    %206 = tpu.reciprocal %205 {approx = true} : vector<4x8x1xf32> -> vector<4x8x1xf32>
    %207 = vector.broadcast %206 : vector<4x8x1xf32> to vector<4x8x8xf32>
    %208 = arith.mulf %203, %207 : vector<4x8x8xf32>
    "tpu.trace_start"() <{level = 10 : i32, message = "hqk,hkd->hqd"}> : () -> ()
    %cst_114 = arith.constant dense<0.000000e+00> : vector<4x8x8xf32>
    %209 = tpu.matmul %208, %197, %cst_114 {dimension_numbers = #tpu.dot_dimension_numbers<[2], [1], [1], [2], [0, 0, 0, 1, 1, 2], [0], [0]>} : vector<4x8x8xf32>, vector<4x8x8xf32>, vector<4x8x8xf32> -> vector<4x8x8xf32>
    %cst_115 = arith.constant 0.000000e+00 : f32
    "tpu.trace_stop"() : () -> ()
    %210 = vector.broadcast %cst_115 : f32 to vector<8x32xf32>
    %211 = vector.extract_strided_slice %209 {offsets = [0, 0, 0], sizes = [1, 8, 8], strides = [1, 1, 1]} : vector<4x8x8xf32> to vector<1x8x8xf32>
    %212 = vector.shape_cast %211 : vector<1x8x8xf32> to vector<8x8xf32>
    %c0_116 = arith.constant 0 : index
    %c0_117 = arith.constant 0 : index
    %c0_118 = arith.constant 0 : index
    %213 = vector.load %arg9[%c0_116, %c0_117, %c0_118] : memref<4x8x32xf32, #tpu.memory_space<vmem>>, vector<1x8x32xf32>
    %214 = vector.shape_cast %213 : vector<1x8x32xf32> to vector<8x32xf32>
    %cst_119 = arith.constant dense<0.000000e+00> : vector<8x32xf32>
    %215 = tpu.matmul %212, %214, %cst_119 {dimension_numbers = #tpu.dot_dimension_numbers<[1], [0], [0], [1], [0, 0, 1, 1], [], []>} : vector<8x8xf32>, vector<8x32xf32>, vector<8x32xf32> -> vector<8x32xf32>
    %216 = arith.addf %210, %215 : vector<8x32xf32>
    %217 = vector.extract_strided_slice %209 {offsets = [1, 0, 0], sizes = [1, 8, 8], strides = [1, 1, 1]} : vector<4x8x8xf32> to vector<1x8x8xf32>
    %218 = vector.shape_cast %217 : vector<1x8x8xf32> to vector<8x8xf32>
    %c1_120 = arith.constant 1 : index
    %c0_121 = arith.constant 0 : index
    %c0_122 = arith.constant 0 : index
    %219 = vector.load %arg9[%c1_120, %c0_121, %c0_122] : memref<4x8x32xf32, #tpu.memory_space<vmem>>, vector<1x8x32xf32>
    %220 = vector.shape_cast %219 : vector<1x8x32xf32> to vector<8x32xf32>
    %cst_123 = arith.constant dense<0.000000e+00> : vector<8x32xf32>
    %221 = tpu.matmul %218, %220, %cst_123 {dimension_numbers = #tpu.dot_dimension_numbers<[1], [0], [0], [1], [0, 0, 1, 1], [], []>} : vector<8x8xf32>, vector<8x32xf32>, vector<8x32xf32> -> vector<8x32xf32>
    %222 = arith.addf %216, %221 : vector<8x32xf32>
    %223 = vector.extract_strided_slice %209 {offsets = [2, 0, 0], sizes = [1, 8, 8], strides = [1, 1, 1]} : vector<4x8x8xf32> to vector<1x8x8xf32>
    %224 = vector.shape_cast %223 : vector<1x8x8xf32> to vector<8x8xf32>
    %c2_124 = arith.constant 2 : index
    %c0_125 = arith.constant 0 : index
    %c0_126 = arith.constant 0 : index
    %225 = vector.load %arg9[%c2_124, %c0_125, %c0_126] : memref<4x8x32xf32, #tpu.memory_space<vmem>>, vector<1x8x32xf32>
    %226 = vector.shape_cast %225 : vector<1x8x32xf32> to vector<8x32xf32>
    %cst_127 = arith.constant dense<0.000000e+00> : vector<8x32xf32>
    %227 = tpu.matmul %224, %226, %cst_127 {dimension_numbers = #tpu.dot_dimension_numbers<[1], [0], [0], [1], [0, 0, 1, 1], [], []>} : vector<8x8xf32>, vector<8x32xf32>, vector<8x32xf32> -> vector<8x32xf32>
    %228 = arith.addf %222, %227 : vector<8x32xf32>
    %229 = vector.extract_strided_slice %209 {offsets = [3, 0, 0], sizes = [1, 8, 8], strides = [1, 1, 1]} : vector<4x8x8xf32> to vector<1x8x8xf32>
    %230 = vector.shape_cast %229 : vector<1x8x8xf32> to vector<8x8xf32>
    %c3_128 = arith.constant 3 : index
    %c0_129 = arith.constant 0 : index
    %c0_130 = arith.constant 0 : index
    %231 = vector.load %arg9[%c3_128, %c0_129, %c0_130] : memref<4x8x32xf32, #tpu.memory_space<vmem>>, vector<1x8x32xf32>
    %232 = vector.shape_cast %231 : vector<1x8x32xf32> to vector<8x32xf32>
    %cst_131 = arith.constant dense<0.000000e+00> : vector<8x32xf32>
    %233 = tpu.matmul %230, %232, %cst_131 {dimension_numbers = #tpu.dot_dimension_numbers<[1], [0], [0], [1], [0, 0, 1, 1], [], []>} : vector<8x8xf32>, vector<8x32xf32>, vector<8x32xf32> -> vector<8x32xf32>
    %234 = arith.addf %228, %233 : vector<8x32xf32>
    %235 = tpu.concatenate %170, %234 in 0 : vector<8x32xf32>, vector<8x32xf32> -> vector<16x32xf32>
    %c0_132 = arith.constant 0 : index
    %c0_133 = arith.constant 0 : index
    %236 = vector.load %arg10[%c0_132, %c0_133] : memref<1x32xf32, #tpu.memory_space<vmem>>, vector<1x32xf32>
    %237 = vector.broadcast %236 : vector<1x32xf32> to vector<16x32xf32>
    %238 = arith.addf %235, %237 : vector<16x32xf32>
    %239 = arith.addf %0, %238 : vector<16x32xf32>
    %c0_134 = arith.constant 0 : index
    %c0_135 = arith.constant 0 : index
    %240 = vector.load %arg11[%c0_134, %c0_135] : memref<1x32xf32, #tpu.memory_space<vmem>>, vector<1x32xf32>
    %c0_136 = arith.constant 0 : index
    %c0_137 = arith.constant 0 : index
    %241 = vector.load %arg12[%c0_136, %c0_137] : memref<1x32xf32, #tpu.memory_space<vmem>>, vector<1x32xf32>
    %cst_138 = arith.constant dense<0.000000e+00> : vector<16xf32>
    %242 = vector.multi_reduction <add>, %239, %cst_138 [1] : vector<16x32xf32> to vector<16xf32>
    %243 = vector.shape_cast %242 : vector<16xf32> to vector<16x1xf32>
    %cst_139 = arith.constant 3.200000e+01 : f32
    %244 = vector.broadcast %cst_139 : f32 to vector<16x1xf32>
    %245 = arith.divf %243, %244 : vector<16x1xf32>
    %246 = vector.broadcast %245 : vector<16x1xf32> to vector<16x32xf32>
    %247 = arith.subf %239, %246 : vector<16x32xf32>
    %248 = arith.mulf %247, %247 : vector<16x32xf32>
    %cst_140 = arith.constant dense<0.000000e+00> : vector<16xf32>
    %249 = vector.multi_reduction <add>, %248, %cst_140 [1] : vector<16x32xf32> to vector<16xf32>
    %250 = vector.shape_cast %249 : vector<16xf32> to vector<16x1xf32>
    %cst_141 = arith.constant 3.200000e+01 : f32
    %251 = vector.broadcast %cst_141 : f32 to vector<16x1xf32>
    %252 = arith.divf %250, %251 : vector<16x1xf32>
    %cst_142 = arith.constant 9.99999997E-7 : f32
    %253 = vector.broadcast %cst_142 : f32 to vector<16x1xf32>
    %254 = arith.addf %252, %253 : vector<16x1xf32>
    %255 = math.rsqrt %254 : vector<16x1xf32>
    %256 = vector.broadcast %255 : vector<16x1xf32> to vector<16x32xf32>
    %257 = arith.mulf %247, %256 : vector<16x32xf32>
    %258 = vector.broadcast %240 : vector<1x32xf32> to vector<16x32xf32>
    %259 = arith.mulf %257, %258 : vector<16x32xf32>
    %260 = vector.broadcast %241 : vector<1x32xf32> to vector<16x32xf32>
    %261 = arith.addf %259, %260 : vector<16x32xf32>
    %c0_143 = arith.constant 0 : index
    %c0_144 = arith.constant 0 : index
    %262 = vector.load %arg13[%c0_143, %c0_144] : memref<32x64xf32, #tpu.memory_space<vmem>>, vector<32x64xf32>
    %cst_145 = arith.constant dense<0.000000e+00> : vector<16x64xf32>
    %263 = tpu.matmul %261, %262, %cst_145 {dimension_numbers = #tpu.dot_dimension_numbers<[1], [0], [0], [1], [0, 0, 1, 1], [], []>} : vector<16x32xf32>, vector<32x64xf32>, vector<16x64xf32> -> vector<16x64xf32>
    %c0_146 = arith.constant 0 : index
    %c0_147 = arith.constant 0 : index
    %264 = vector.load %arg14[%c0_146, %c0_147] : memref<1x64xf32, #tpu.memory_space<vmem>>, vector<1x64xf32>
    %265 = vector.broadcast %264 : vector<1x64xf32> to vector<16x64xf32>
    %266 = arith.addf %263, %265 : vector<16x64xf32>
    %cst_148 = arith.constant 5.000000e-01 : f32
    %267 = vector.broadcast %cst_148 : f32 to vector<16x64xf32>
    %268 = arith.mulf %267, %266 : vector<16x64xf32>
    %cst_149 = arith.constant 0.707106769 : f32
    %269 = vector.broadcast %cst_149 : f32 to vector<16x64xf32>
    %270 = arith.mulf %266, %269 : vector<16x64xf32>
    %271 = math.erf %270 : vector<16x64xf32>
    %cst_150 = arith.constant 1.000000e+00 : f32
    %272 = vector.broadcast %cst_150 : f32 to vector<16x64xf32>
    %273 = arith.addf %272, %271 : vector<16x64xf32>
    %274 = arith.mulf %268, %273 : vector<16x64xf32>
    %c0_151 = arith.constant 0 : index
    %c0_152 = arith.constant 0 : index
    %275 = vector.load %arg15[%c0_151, %c0_152] : memref<64x32xf32, #tpu.memory_space<vmem>>, vector<64x32xf32>
    %cst_153 = arith.constant dense<0.000000e+00> : vector<16x32xf32>
    %276 = tpu.matmul %274, %275, %cst_153 {dimension_numbers = #tpu.dot_dimension_numbers<[1], [0], [0], [1], [0, 0, 1, 1], [], []>} : vector<16x64xf32>, vector<64x32xf32>, vector<16x32xf32> -> vector<16x32xf32>
    %c0_154 = arith.constant 0 : index
    %c0_155 = arith.constant 0 : index
    %277 = vector.load %arg16[%c0_154, %c0_155] : memref<1x32xf32, #tpu.memory_space<vmem>>, vector<1x32xf32>
    %278 = vector.broadcast %277 : vector<1x32xf32> to vector<16x32xf32>
    %279 = arith.addf %276, %278 : vector<16x32xf32>
    %cst_156 = arith.constant 5.000000e-01 : f32
    %280 = vector.broadcast %cst_156 : f32 to vector<16x32xf32>
    %281 = arith.mulf %280, %279 : vector<16x32xf32>
    %cst_157 = arith.constant 0.707106769 : f32
    %282 = vector.broadcast %cst_157 : f32 to vector<16x32xf32>
    %283 = arith.mulf %279, %282 : vector<16x32xf32>
    %284 = math.erf %283 : vector<16x32xf32>
    %cst_158 = arith.constant 1.000000e+00 : f32
    %285 = vector.broadcast %cst_158 : f32 to vector<16x32xf32>
    %286 = arith.addf %285, %284 : vector<16x32xf32>
    %287 = arith.mulf %281, %286 : vector<16x32xf32>
    %288 = arith.addf %261, %287 : vector<16x32xf32>
    %c0_159 = arith.constant 0 : index
    %c0_160 = arith.constant 0 : index
    %289 = vector.load %arg17[%c0_159, %c0_160] : memref<1x32xf32, #tpu.memory_space<vmem>>, vector<1x32xf32>
    %c0_161 = arith.constant 0 : index
    %c0_162 = arith.constant 0 : index
    %290 = vector.load %arg18[%c0_161, %c0_162] : memref<1x32xf32, #tpu.memory_space<vmem>>, vector<1x32xf32>
    %cst_163 = arith.constant dense<0.000000e+00> : vector<16xf32>
    %291 = vector.multi_reduction <add>, %288, %cst_163 [1] : vector<16x32xf32> to vector<16xf32>
    %292 = vector.shape_cast %291 : vector<16xf32> to vector<16x1xf32>
    %cst_164 = arith.constant 3.200000e+01 : f32
    %293 = vector.broadcast %cst_164 : f32 to vector<16x1xf32>
    %294 = arith.divf %292, %293 : vector<16x1xf32>
    %295 = vector.broadcast %294 : vector<16x1xf32> to vector<16x32xf32>
    %296 = arith.subf %288, %295 : vector<16x32xf32>
    %297 = arith.mulf %296, %296 : vector<16x32xf32>
    %cst_165 = arith.constant dense<0.000000e+00> : vector<16xf32>
    %298 = vector.multi_reduction <add>, %297, %cst_165 [1] : vector<16x32xf32> to vector<16xf32>
    %299 = vector.shape_cast %298 : vector<16xf32> to vector<16x1xf32>
    %cst_166 = arith.constant 3.200000e+01 : f32
    %300 = vector.broadcast %cst_166 : f32 to vector<16x1xf32>
    %301 = arith.divf %299, %300 : vector<16x1xf32>
    %cst_167 = arith.constant 9.99999997E-7 : f32
    %302 = vector.broadcast %cst_167 : f32 to vector<16x1xf32>
    %303 = arith.addf %301, %302 : vector<16x1xf32>
    %304 = math.rsqrt %303 : vector<16x1xf32>
    %305 = vector.broadcast %304 : vector<16x1xf32> to vector<16x32xf32>
    %306 = arith.mulf %296, %305 : vector<16x32xf32>
    %307 = vector.broadcast %289 : vector<1x32xf32> to vector<16x32xf32>
    %308 = arith.mulf %306, %307 : vector<16x32xf32>
    %309 = vector.broadcast %290 : vector<1x32xf32> to vector<16x32xf32>
    %310 = arith.addf %308, %309 : vector<16x32xf32>
    %c0_168 = arith.constant 0 : index
    %c0_169 = arith.constant 0 : index
    %311 = vector.load %arg19[%c0_168, %c0_169] : memref<16x32xf32, #tpu.memory_space<vmem>>, vector<16x32xf32>
    tpu.vector_store %arg19[%c0_168, %c0_169], %310 {strides = array<i32>} : memref<16x32xf32, #tpu.memory_space<vmem>>, vector<16x32xf32>,
    return
  }
}

</mosaic_0001>

<bundles_post_ra>
// kernel: tpu_custom_call.1
= control target key start
LH: loop header
LB: loop body
LE: loop exit
PB: predicated region body
PF: predicated region fallthrough
CT: control target
= control target key end

     0   :  { %s2434_s0 = inlined_call_operand.vmem [shape: f32[16,32], index: 0, kind: input, shape index: {}]   ;;  %s2435_s1 = inlined_call_operand.vmem [shape: f32[1,32], index: 1, kind: input, shape index: {}]   ;;  %s2436_s2 = inlined_call_operand.vmem [shape: f32[1,32], index: 2, kind: input, shape index: {}]   ;;  %s2437_s3 = inlined_call_operand.vmem [shape: f32[4,32,8], index: 3, kind: input, shape index: {}]   ;;  %s2438_s4 = inlined_call_operand.vmem [shape: f32[4,1,8], index: 4, kind: input, shape index: {}]   ;;  %s2439_s5 = inlined_call_operand.vmem [shape: f32[4,32,8], index: 5, kind: input, shape index: {}]   ;;  %s2440_s6 = inlined_call_operand.vmem [shape: f32[4,1,8], index: 6, kind: input, shape index: {}]   ;;  %s2441_s7 = inlined_call_operand.vmem [shape: f32[4,32,8], index: 7, kind: input, shape index: {}]   ;;  %s2442_s8 = inlined_call_operand.vmem [shape: f32[4,1,8], index: 8, kind: input, shape index: {}]   ;;  %s2443_s9 = inlined_call_operand.vmem [shape: f32[4,8,32], index: 9, kind: input, shape index: {}]   ;;  %s2444_s10 = inlined_call_operand.vmem [shape: f32[1,32], index: 10, kind: input, shape index: {}]   ;;  %s2445_s11 = inlined_call_operand.vmem [shape: f32[1,32], index: 11, kind: input, shape index: {}]   ;;  %s2446_s12 = inlined_call_operand.vmem [shape: f32[1,32], index: 12, kind: input, shape index: {}]   ;;  %s2447_s13 = inlined_call_operand.vmem [shape: f32[32,64], index: 13, kind: input, shape index: {}]   ;;  %s2448_s14 = inlined_call_operand.vmem [shape: f32[1,64], index: 14, kind: input, shape index: {}]   ;;  %s2449_s15 = inlined_call_operand.vmem [shape: f32[64,32], index: 15, kind: input, shape index: {}]   ;;  %s2450_s16 = inlined_call_operand.vmem [shape: f32[1,32], index: 16, kind: input, shape index: {}]   ;;  %s2451_s17 = inlined_call_operand.vmem [shape: f32[1,32], index: 17, kind: input, shape index: {}]   ;;  %s2452_s18 = inlined_call_operand.vmem [shape: f32[1,32], index: 18, kind: input, shape index: {}]   ;;  %s2453_s19 = inlined_call_operand.hbm [shape: f32[16,32], index: 19, kind: output, shape index: {}]  }
   0x1   :  { %2456 = sst [smem:[#allocation5_spill]] %s2434_s0 }
   0x2   :  { %2457 = sst [smem:[#allocation6_spill]] %s2435_s1 }
   0x3   :  { %2458 = sst [smem:[#allocation7_spill]] %s2436_s2 }
   0x4   :  { %2459 = sst [smem:[#allocation8_spill]] %s2437_s3 }
   0x5   :  { %s2460_s20 = sld [smem:[#allocation5_spill]]  ;;  %vm67_vm0 = vcmask 261120  }
   0xb   :  { %v1933_v0 = vld [vmem:[%s2460_s20] sm:$0xff]  ;;  %v1938_v1 = vld [vmem:[%s2460_s20 + $0x8] sm:$0xff] }
   0xc   :  { %v68_v2 = vsel %vm67_vm0, %v1933_v0, 0.0  ;;  %v71_v3 = vsel %vm67_vm0, %v1938_v1, 0.0 }
   0xd   :  { %69 = vadd.xlane.f32.xlu0 %v68_v2 }
   0xe   :  { %24 = vsyncpa [#allocation3], 0  ;;  %v1826_v4 = vmov 32.0   ;;  %s2461_s23 = sld [smem:[#allocation8_spill]]  ;;  %v1630_v23 = vld [vmem:[%s2439_s5 + $0x38] sm:$0xff]  ;;  %v1629_v26 = vld [vmem:[%s2439_s5 + $0x30] sm:$0xff] }
   0xf   :  { %1746 = vrcp.f32 %v1826_v4  ;;  %318 = vmatpush.msra.mxu1 %v1630_v23  ;;  %v1628_v29 = vld [vmem:[%s2439_s5 + $0x28] sm:$0xff]  ;;  %v1627_v32 = vld [vmem:[%s2439_s5 + $0x20] sm:$0xff]  ;;  %v268_v33 = vld [vmem:[%s2439_s5 + $0x18] sm:$0xff]  ;;  %s2462_s2 = sld [smem:[#allocation6_spill]]  ;;  %vm525_vm8 = vcmask 64512  }
  0x10   :  { %v267_v35 = vld [vmem:[%s2439_s5 + $0x10] sm:$0xff]  ;;  %v266_v37 = vld [vmem:[%s2439_s5 + $0x8] sm:$0xff]  ;;  %v265_v39 = vld [vmem:[%s2439_s5] sm:$0xff]  ;;  %s2463_s3 = sld [smem:[#allocation7_spill]] }
  0x11   :  { %319 = vmatpush.msra.mxu1 %v1629_v26  ;;  %v1653_v42 = vld [vmem:[%s2441_s7 + $0x38] sm:$0xff]  ;;  %v1652_v45 = vld [vmem:[%s2441_s7 + $0x30] sm:$0xff]  ;;  %v1651_v50 = vld [vmem:[%s2441_s7 + $0x28] sm:$0xff] }
  0x12   :  { %v1650_v55 = vld [vmem:[%s2441_s7 + $0x20] sm:$0xff]  ;;  %v1642_v26 = vld [vmem:[%s2439_s5 + $0x68] sm:$0xff] }
  0x13   :  { %320 = vmatpush.msra.mxu1 %v1628_v29  ;;  %v1667_v29 = vld [vmem:[%s2441_s7 + $0x78] sm:$0xff] }
  0x14   :  { %v132_v21 = vld [vmem:[%s2461_s23 + $0x18] sm:$0xff]  ;;  %v131_v24 = vld [vmem:[%s2461_s23 + $0x10] sm:$0xff]  ;;  %v130_v27 = vld [vmem:[%s2461_s23 + $0x8] sm:$0xff] }
  0x15   :  { %72 = vadd.xlane.f32.xlu0 %v71_v3  ;;  %v1747_v5 = vpop.eup %1746  ;;  %v1607_v22 = vld [vmem:[%s2461_s23 + $0x38] sm:$0xff]  ;;  %155 = vmatpush.msra.mxu0 %v132_v21  ;;  %v1606_v25 = vld [vmem:[%s2461_s23 + $0x30] sm:$0xff]  ;;  %v1605_v28 = vld [vmem:[%s2461_s23 + $0x28] sm:$0xff] }
  0x16   :  { %v75_v6 = vmul.f32 32.0, %v1747_v5  ;;  %vm79_vm1 = vweird.f32 %v1747_v5  ;;  %188 = vmatpush.msra.mxu2 %v1607_v22  ;;  %1717 = vmatpush.msra.mxu3 %v132_v21  ;;  %v129_v30 = vld [vmem:[%s2461_s23] sm:$0xff]  ;;  %v1614_v40 = vld [vmem:[%s2461_s23 + $0x58] sm:$0xff]  ;;  %v1613_v43 = vld [vmem:[%s2461_s23 + $0x50] sm:$0xff] }
  0x17   :  { %156 = vmatpush.msra.mxu0 %v131_v24  ;;  %v1604_v31 = vld [vmem:[%s2461_s23 + $0x20] sm:$0xff]  ;;  %321 = vmatpush.msra.mxu1 %v1627_v32  ;;  %v1621_v41 = vld [vmem:[%s2461_s23 + $0x78] sm:$0xff]  ;;  %v1620_v44 = vld [vmem:[%s2461_s23 + $0x70] sm:$0xff] }
  0x18   :  { %v76_v7 = vsub.f32 1.0, %v75_v6  ;;  %189 = vmatpush.msra.mxu2 %v1606_v25  ;;  %1718 = vmatpush.msra.mxu3 %v131_v24  ;;  %v1612_v47 = vld [vmem:[%s2461_s23 + $0x48] sm:$0xff]  ;;  %v1611_v51 = vld [vmem:[%s2461_s23 + $0x40] sm:$0xff]  ;;  %v1643_v25 = vld [vmem:[%s2439_s5 + $0x70] sm:$0xff] }
  0x19   :  { %157 = vmatpush.msra.mxu0 %v130_v27  ;;  %448 = vmatpush.msrb.mxu1 %v1653_v42  ;;  %v1619_v48 = vld [vmem:[%s2461_s23 + $0x68] sm:$0xff]  ;;  %v1618_v52 = vld [vmem:[%s2461_s23 + $0x60] sm:$0xff] }
  0x1a   :  { %v77_v8 = vmul.f32 %v1747_v5, %v76_v7  ;;  %190 = vmatpush.msra.mxu2 %v1605_v28  ;;  %1719 = vmatpush.msra.mxu3 %v130_v27  ;;  %v1725_v63 = vld [vmem:[%s2462_s2] ss:$0 sm:$0xff]  ;;  %v1660_v28 = vld [vmem:[%s2441_s7 + $0x58] sm:$0xff]  ;;  %v1658_v32 = vld [vmem:[%s2441_s7 + $0x48] sm:$0xff]  ;;  %s1828_s2 = smov 128  }
  0x1b   :  { %158 = vmatpush.msra.mxu0 %v129_v30  ;;  %449 = vmatpush.msrb.mxu1 %v1652_v45  ;;  %v1726_v4 = vld [vmem:[%s2463_s3] ss:$0 sm:$0xff] }
  0x1c   :  { %v78_v9 = vadd.f32 %v1747_v5, %v77_v8  ;;  %191 = vmatpush.msra.mxu2 %v1604_v31  ;;  %1720 = vmatpush.msra.mxu3 %v129_v30  ;;  %v395_v22 = vld [vmem:[%s2441_s7] sm:$0xff]  ;;  %v1659_v30 = vld [vmem:[%s2441_s7 + $0x50] sm:$0xff] }
  0x1d   :  { %285 = vmatpush.msrb.mxu0 %v268_v33  ;;  %450 = vmatpush.msrb.mxu1 %v1651_v50  ;;  %v1634_v24 = vld [vmem:[%s2439_s5 + $0x40] sm:$0xff]  ;;  %v1666_v31 = vld [vmem:[%s2441_s7 + $0x70] sm:$0xff]  ;;  %v1665_v33 = vld [vmem:[%s2441_s7 + $0x68] sm:$0xff] }
  0x1e   :  { %v1944_v10 = vsel %vm79_vm1, %v1747_v5, %v78_v9  ;;  %221 = vmatpush.msrb.mxu2 %v1614_v40  ;;  %254 = vmatpush.msrb.mxu3 %v1621_v41  ;;  %v1641_v27 = vld [vmem:[%s2439_s5 + $0x60] sm:$0xff]  ;;  %vm1406_vm1 = vcmask 523264  }
  0x1f   :  { %286 = vmatpush.msrb.mxu0 %v267_v35  ;;  %451 = vmatpush.msrb.mxu1 %v1650_v55  ;;  %v1664_v35 = vld [vmem:[%s2441_s7 + $0x60] sm:$0xff] }
  0x20   :  { %222 = vmatpush.msrb.mxu2 %v1613_v43  ;;  %255 = vmatpush.msrb.mxu3 %v1620_v44  ;;  %v1729_v40 = vld [vmem:[%s2438_s4 + $0x1] ss:$0 sm:$0xff]  ;;  %v1730_v42 = vld [vmem:[%s2440_s6] ss:$0 sm:$0xff] }
  0x21   :  { %287 = vmatpush.msrb.mxu0 %v266_v37  ;;  %v1727_v44 = vld [vmem:[%s2438_s4] ss:$0 sm:$0xff] }
  0x22   :  { %223 = vmatpush.msrb.mxu2 %v1612_v47  ;;  %256 = vmatpush.msrb.mxu3 %v1619_v48 }
  0x23   :  { %288 = vmatpush.msrb.mxu0 %v265_v39 }
  0x24   :  { %224 = vmatpush.msrb.mxu2 %v1611_v51  ;;  %257 = vmatpush.msrb.mxu3 %v1618_v52  ;;  %v2172_v52 = vld [vmem:[%s2442_s8 + $0x1] ss:$0 sm:$0xff] }
  0x80   :  { %v70_v11 = vpop.xlane.xlu0 %69 }
  0x81   :  { %v81_v12 = vmul.f32 %v1944_v10, %v70_v11  ;;  %v398_v11 = vld [vmem:[%s2441_s7 + $0x18] sm:$0xff] }
  0x83   :  { %v1948_v13 = vsub.f32 %v1933_v0, %v81_v12 }
  0x85   :  { %v85_v14 = vmul.f32 %v1948_v13, %v1948_v13 }
  0x87   :  { %v87_v15 = vsel %vm67_vm0, %v85_v14, 0.0  ;;  %v1637_v14 = vld [vmem:[%s2439_s5 + $0x58] sm:$0xff] }
  0x88   :  { %88 = vadd.xlane.f32.xlu1 %v87_v15  ;;  %v73_v16 = vpop.xlane.xlu0 %72 }
  0x89   :  { %v82_v17 = vmul.f32 %v1944_v10, %v73_v16  ;;  %v1636_v16 = vld [vmem:[%s2439_s5 + $0x50] sm:$0xff] }
  0x8b   :  { %v1955_v18 = vsub.f32 %v1938_v1, %v82_v17 }
  0x8d   :  { %v86_v19 = vmul.f32 %v1955_v18, %v1955_v18 }
  0x8f   :  { %v90_v20 = vsel %vm67_vm0, %v86_v19, 0.0  ;;  %v396_v19 = vld [vmem:[%s2441_s7 + $0x8] sm:$0xff] }
  0x90   :  { %91 = vadd.xlane.f32.xlu1 %v90_v20  ;;  %v1635_v20 = vld [vmem:[%s2439_s5 + $0x48] sm:$0xff] }
  0xfb   :  { %v89_v34 = vpop.xlane.xlu1 %88 }
  0xfc   :  { %v93_v36 = vmul.f32 %v89_v34, %v1944_v10  ;;  %v1657_v34 = vld [vmem:[%s2441_s7 + $0x40] sm:$0xff] }
  0xfe   :  { %v95_v38 = vadd.f32 1e-06, %v93_v36  ;;  %v1728_v36 = vld [vmem:[%s2440_s6 + $0x1] ss:$0 sm:$0xff] }
 0x100   :  { %1748 = vrsqrt.f32 %v95_v38  ;;  %vm103_vm3 = vweird.f32 %v95_v38 }
 0x103   :  { %v92_v46 = vpop.xlane.xlu1 %91 }
 0x104   :  { %v94_v49 = vmul.f32 %v92_v46, %v1944_v10 }
 0x106   :  { %v1749_v53 = vpop.eup %1748  ;;  %v96_v54 = vadd.f32 1e-06, %v94_v49 }
 0x107   :  { %v98_v56 = vmul.f32 %v1749_v53, %v95_v38  ;;  %vm104_vm2 = vweird.f32 %v1749_v53 }
 0x108   :  { %1750 = vrsqrt.f32 %v96_v54  ;;  %vm105_vm4 = vmor %vm103_vm3, %vm104_vm2  ;;  %vm113_vm6 = vweird.f32 %v96_v54 }
 0x109   :  { %v99_v57 = vmul.f32 %v1749_v53, %v98_v56 }
 0x10b   :  { %v100_v58 = vmul.f32 0.5, %v99_v57 }
 0x10d   :  { %v101_v59 = vsub.f32 1.5, %v100_v58 }
 0x10e   :  { %v1751_v60 = vpop.eup %1750 }
 0x10f   :  { %v102_v61 = vmul.f32 %v1749_v53, %v101_v59  ;;  %v108_v62 = vmul.f32 %v1751_v60, %v96_v54  ;;  %vm114_vm5 = vweird.f32 %v1751_v60 }
 0x110   :  { %vm115_vm7 = vmor %vm113_vm6, %vm114_vm5 }
 0x111   :  { %v106_v2 = vsel %vm105_vm4, %v1749_v53, %v102_v61  ;;  %v109_v3 = vmul.f32 %v1751_v60, %v108_v62  ;;  %v2185_v61 = vld [vmem:[%s2442_s8] ss:$0 sm:$0xff] }
 0x112   :  { %v117_v5 = vmul.f32 %v106_v2, %v1948_v13  ;;  %v397_v13 = vld [vmem:[%s2441_s7 + $0x10] sm:$0xff]  ;;  %v1732_v2 = vld [vmem:[%s2438_s4 + $0x2] ss:$0 sm:$0xff] }
 0x113   :  { %v110_v6 = vmul.f32 0.5, %v109_v3  ;;  %v1733_v3 = vld [vmem:[%s2438_s4 + $0x3] ss:$0 sm:$0xff] }
 0x114   :  { %v122_v7 = vmul.f32 %v1725_v63, %v117_v5 }
 0x115   :  { %v111_v8 = vsub.f32 1.5, %v110_v6 }
 0x116   :  { %v2053_v9 = vadd.f32 %v1726_v4, %v122_v7 }
 0x117   :  { %v112_v12 = vmul.f32 %v1751_v60, %v111_v8  ;;  %v1735_v8 = vld [vmem:[%s2440_s6 + $0x2] ss:$0 sm:$0xff] }
 0x118   :  { %1602 = vmatmul.msk.f32.vlgmr.msra.gmra.mxu0 %vm67_vm0, %v2053_v9  ;;  %1609 = vmatmul.msk.f32.vlgmr.msra.gmra.mxu2 %vm67_vm0, %v2053_v9 }
 0x119   :  { %v116_v15 = vsel %vm115_vm7, %v1751_v60, %v112_v12  ;;  %1632 = vmatmul.msk.f32.vlgmr.msra.gmra.mxu1 %vm67_vm0, %v2053_v9  ;;  %415 = vmatpush.msra.mxu0 %v398_v11 }
 0x11a   :  { %v118_v17 = vmul.f32 %v116_v15, %v1955_v18  ;;  %351 = vmatpush.msra.mxu2 %v1637_v14  ;;  %v1644_v18 = vld [vmem:[%s2439_s5 + $0x78] sm:$0xff] }
 0x11b   :  { %416 = vmatpush.msra.mxu0 %v397_v13 }
 0x11c   :  { %v123_v21 = vmul.f32 %v1725_v63, %v118_v17  ;;  %352 = vmatpush.msra.mxu2 %v1636_v16 }
 0x11d   :  { %417 = vmatpush.msra.mxu0 %v396_v19 }
 0x11e   :  { %v128_v23 = vadd.f32 %v1726_v4, %v123_v21  ;;  %353 = vmatpush.msra.mxu2 %v1635_v20 }
 0x11f   :  { %418 = vmatpush.msra.mxu0 %v395_v22  ;;  %v2215_v22 = vld [vmem:[%s2442_s8 + $0x2] ss:$0 sm:$0xff] }
 0x120   :  { %1603 = vmatmul.msk.f32.vlgmr.msra.gmra.mxu3 %vm67_vm0, %v128_v23  ;;  %1610 = vmatmul.msk.f32.gmra.mxu2 %vm67_vm0, %v128_v23 }
 0x121   :  { %1625 = vmatmul.msk.f32.vlgmr.msrb.gmra.mxu0 %vm67_vm0, %v2053_v9  ;;  %1633 = vmatmul.msk.f32.gmra.mxu1 %vm67_vm0, %v128_v23 }
 0x122   :  { %384 = vmatpush.msra.mxu3 %v1644_v18  ;;  %354 = vmatpush.msra.mxu2 %v1634_v24 }
 0x124   :  { %385 = vmatpush.msra.mxu3 %v1643_v25 }
 0x126   :  { %386 = vmatpush.msra.mxu3 %v1642_v26 }
 0x128   :  { %1616 = vmatmul.msk.f32.vlgmr.msrb.gmra.mxu2 %vm67_vm0, %v2053_v9  ;;  %1623 = vmatmul.msk.f32.vlgmr.msrb.gmra.mxu3 %vm67_vm0, %v2053_v9 }
 0x129   :  { %1626 = vmatmul.msk.f32.gmra.mxu0 %vm67_vm0, %v128_v23  ;;  %1655 = vmatmul.msk.f32.vlgmr.msrb.gmra.mxu1 %vm67_vm0, %v2053_v9 }
 0x12a   :  { %387 = vmatpush.msra.mxu3 %v1641_v27  ;;  %481 = vmatpush.msrb.mxu2 %v1660_v28 }
 0x12c   :  { %514 = vmatpush.msrb.mxu3 %v1667_v29  ;;  %482 = vmatpush.msrb.mxu2 %v1659_v30 }
 0x12e   :  { %515 = vmatpush.msrb.mxu3 %v1666_v31  ;;  %483 = vmatpush.msrb.mxu2 %v1658_v32 }
 0x130   :  { %516 = vmatpush.msrb.mxu3 %v1665_v33  ;;  %1617 = vmatmul.msk.f32.gmra.mxu2 %vm67_vm0, %v128_v23 }
 0x131   :  { %1624 = vmatmul.msk.f32.gmra.mxu3 %vm67_vm0, %v128_v23  ;;  %1648 = vmatmul.msk.f32.vlgmr.msra.gmra.mxu0 %vm67_vm0, %v2053_v9 }
 0x132   :  { %1656 = vmatmul.msk.f32.gmra.mxu1 %vm67_vm0, %v128_v23  ;;  %484 = vmatpush.msrb.mxu2 %v1657_v34 }
 0x133   :  { %517 = vmatpush.msrb.mxu3 %v1664_v35 }
 0x138   :  { %1639 = vmatmul.msk.f32.vlgmr.msra.gmra.mxu2 %vm67_vm0, %v2053_v9 }
 0x139   :  { %1646 = vmatmul.msk.f32.vlgmr.msra.gmra.mxu3 %vm67_vm0, %v2053_v9  ;;  %1649 = vmatmul.msk.f32.gmra.mxu0 %vm67_vm0, %v128_v23 }
 0x140   :  { %1640 = vmatmul.msk.f32.gmra.mxu2 %vm67_vm0, %v128_v23 }
 0x141   :  { %1647 = vmatmul.msk.f32.gmra.mxu3 %vm67_vm0, %v128_v23 }
 0x148   :  { %1662 = vmatmul.msk.f32.vlgmr.msrb.gmra.mxu2 %vm67_vm0, %v2053_v9 }
 0x149   :  { %1669 = vmatmul.msk.f32.vlgmr.msrb.gmra.mxu3 %vm67_vm0, %v2053_v9  ;;  %v1736_v9 = vld [vmem:[%s2440_s6 + $0x3] ss:$0 sm:$0xff]  ;;  %s1590_s6 = sshll.u32 %s2453_s19, 4  ;;  %s1591_s6 = int_to_ptr.hbm [resolvable:$true] %s1590_s6 }
 0x150   :  { %1663 = vmatmul.msk.f32.gmra.mxu2 %vm67_vm0, %v128_v23 }
 0x151   :  { %1670 = vmatmul.msk.f32.gmra.mxu3 %vm67_vm0, %v128_v23  ;;  %v2220_v23 = vld [vmem:[%s2442_s8 + $0x3] ss:$0 sm:$0xff] }
 0x195   :  { %v160_v37 = vpop.f32.mrf.mxu0 }
 0x196   :  { %v323_v38 = vpop.f32.mrf.mxu1  ;;  %v161_v49 = vadd.f32 %v1727_v44, %v160_v37 }
 0x197   :  { %v324_v39 = vadd.f32 %v1728_v36, %v323_v38 }
 0x199   :  { %1673 = vmatpush.xpose.msk.msra.mxu1 %vm525_vm8, %v324_v39 }
 0x19b   :  { %v193_v41 = vpop.f32.mrf.mxu2 }
 0x19c   :  { %v194_v43 = vadd.f32 %v1729_v40, %v193_v41 }
 0x19e   :  { %v290_v45 = vpop.f32.mrf.mxu0  ;;  %v326_v46 = vpop.f32.mrf.mxu1  ;;  %1674 = vmatmul.msk.f32.vlgmr.msra.gmra.mxu1 %vm525_vm8, %v194_v43 }
 0x19f   :  { %v291_v47 = vadd.f32 %v1730_v42, %v290_v45  ;;  %v2166_v48 = vadd.f32 %v1728_v36, %v326_v46 }
 0x1a1   :  { %1671 = vmatpush.xpose.msk.msrb.mxu0 %vm525_vm8, %v291_v47 }
 0x1a3   :  { %v163_v50 = vpop.f32.mrf.mxu3  ;;  %v196_v51 = vpop.f32.mrf.mxu2 }
 0x1a4   :  { %v2174_v53 = vadd.f32 %v1727_v44, %v163_v50  ;;  %v2176_v54 = vadd.f32 %v1729_v40, %v196_v51  ;;  %1672 = vmatmul.msk.f32.vlgmr.msrb.gmra.mxu0 %vm525_vm8, %v161_v49 }
 0x1a6   :  { %v293_v55 = vpop.f32.mrf.mxu0  ;;  %v453_v56 = vpop.f32.mrf.mxu1 }
 0x1a7   :  { %v2179_v57 = vadd.f32 %v1730_v42, %v293_v55  ;;  %v454_v58 = vadd.f32 %v2172_v52, %v453_v56 }
 0x1a9   :  { %715 = vmatpush.msrb.mxu1 %v454_v58 }
 0x1ab   :  { %v226_v59 = vpop.f32.mrf.mxu2  ;;  %v259_v60 = vpop.f32.mrf.mxu3 }
 0x1ac   :  { %v227_v15 = vadd.f32 %v1732_v2, %v226_v59  ;;  %v260_v16 = vadd.f32 %v1733_v3, %v259_v60 }
 0x1ae   :  { %v420_v62 = vpop.f32.mrf.mxu0 }
 0x1af   :  { %v421_v63 = vadd.f32 %v2185_v61, %v420_v62  ;;  %v2224_v27 = vpop.f32.mrf.mxu1 }
 0x1b1   :  { %692 = vmatpush.msra.mxu0 %v421_v63 }
 0x1b3   :  { %v229_v4 = vpop.f32.mrf.mxu2 }
 0x1b4   :  { %v262_v5 = vpop.f32.mrf.mxu3  ;;  %v2194_v6 = vadd.f32 %v1732_v2, %v229_v4 }
 0x1b5   :  { %v2196_v7 = vadd.f32 %v1733_v3, %v262_v5  ;;  %v1683_v3 = vld [vmem:[%s2443_s9 + $0x8] sm:$0xff] }
 0x1b6   :  { %v2226_v28 = vpop.f32.mrf.mxu0  ;;  %787 = vmatpush.msrb.mxu0 %v1683_v3 }
 0x1bb   :  { %v356_v11 = vpop.f32.mrf.mxu2 }
 0x1bc   :  { %v389_v12 = vpop.f32.mrf.mxu3  ;;  %v357_v14 = vadd.f32 %v1735_v8, %v356_v11  ;;  %v766_v11 = vld [vmem:[%s2443_s9] sm:$0xff] }
 0x1bd   :  { %v390_v13 = vadd.f32 %v1736_v9, %v389_v12  ;;  %v1688_v12 = vld [vmem:[%s2443_s9 + $0x18] sm:$0xff]  ;;  %810 = vmatpush.msra.mxu1 %v766_v11 }
 0x1be   :  { %1675 = vmatpush.xpose.msk.msra.mxu2 %vm525_vm8, %v357_v14 }
 0x1bf   :  { %1677 = vmatpush.xpose.msk.msra.mxu3 %vm525_vm8, %v390_v13 }
 0x1c1   :  { %1676 = vmatmul.msk.f32.vlgmr.msra.gmra.mxu2 %vm525_vm8, %v227_v15 }
 0x1c2   :  { %1678 = vmatmul.msk.f32.vlgmr.msra.gmra.mxu3 %vm525_vm8, %v260_v16 }
 0x1c3   :  { %v359_v17 = vpop.f32.mrf.mxu2 }
 0x1c4   :  { %v392_v19 = vpop.f32.mrf.mxu3  ;;  %v2208_v20 = vadd.f32 %v1735_v8, %v359_v17 }
 0x1c5   :  { %v2210_v21 = vadd.f32 %v1736_v9, %v392_v19  ;;  %v1686_v9 = vld [vmem:[%s2443_s9 + $0x10] sm:$0xff] }
 0x1cb   :  { %v486_v18 = vpop.f32.mrf.mxu2 }
 0x1cc   :  { %v519_v24 = vpop.f32.mrf.mxu3  ;;  %v487_v25 = vadd.f32 %v2215_v22, %v486_v18 }
 0x1cd   :  { %v520_v26 = vadd.f32 %v2220_v23, %v519_v24 }
 0x1ce   :  { %738 = vmatpush.msrb.mxu2 %v487_v25  ;;  %v457_v25 = vadd.f32 %v2172_v52, %v2224_v27 }
 0x1cf   :  { %761 = vmatpush.msrb.mxu3 %v520_v26 }
 0x1d0   :  { %835 = vmatpush.msra.mxu2 %v1686_v9 }
 0x1d1   :  { %861 = vmatpush.msra.mxu3 %v1688_v12 }
 0x1d3   :  { %v2230_v33 = vpop.f32.mrf.mxu2 }
 0x1d4   :  { %v2232_v34 = vpop.f32.mrf.mxu3 }
 0x1d5   :  { %v523_v52 = vadd.f32 %v2220_v23, %v2232_v34 }
 0x21b   :  { %v575_v29 = vpop.f32.mrf.mxu1 }
 0x21c   :  { %v633_v30 = vsel %vm525_vm8, %v575_v29, -inf }
 0x21d   :  { %634 = vmax.xlane.f32.xlu1 %v633_v30 }
 0x221   :  { %v549_v31 = vpop.f32.mrf.mxu0 }
 0x222   :  { %v630_v32 = vsel %vm525_vm8, %v549_v31, -inf }
 0x223   :  { %631 = vmax.xlane.f32.xlu0 %v630_v32 }
 0x244   :  { %v601_v35 = vpop.f32.mrf.mxu2 }
 0x245   :  { %v636_v36 = vsel %vm525_vm8, %v601_v35, -inf  ;;  %v627_v37 = vpop.f32.mrf.mxu3 }
 0x246   :  { %637 = vmax.xlane.f32.xlu2 %v636_v36  ;;  %v639_v38 = vsel %vm525_vm8, %v627_v37, -inf }
 0x24e   :  { %640 = vmax.xlane.f32.xlu2 %v639_v38 }
 0x290   :  { %v635_v44 = vpop.xlane.xlu1 %634 }
 0x291   :  { %v643_v47 = vsub.f32 %v575_v29, %v635_v44 }
 0x293   :  { %v648_v50 = vmul.f32 1.442695, %v643_v47 }
 0x296   :  { %v632_v39 = vpop.xlane.xlu0 %631 }
 0x297   :  { %v642_v40 = vsub.f32 %v549_v31, %v632_v39 }
 0x299   :  { %v646_v41 = vmul.f32 1.442695, %v642_v40 }
 0x29b   :  { %1752 = vpow2.f32 %v646_v41 }
 0x2a1   :  { %v1753_v42 = vpop.eup %1752 }
 0x2a2   :  { %v654_v43 = vsel %vm525_vm8, %v1753_v42, 0.0 }
 0x2a3   :  { %655 = vadd.xlane.f32.xlu1 %v654_v43 }
 0x2b9   :  { %v638_v45 = vpop.xlane.xlu2 %637 }
 0x2ba   :  { %v644_v46 = vsub.f32 %v601_v35, %v638_v45 }
 0x2bc   :  { %v650_v49 = vmul.f32 1.442695, %v644_v46 }
 0x2be   :  { %1754 = vpow2.f32 %v650_v49 }
 0x2bf   :  { %1756 = vpow2.f32 %v648_v50 }
 0x2c1   :  { %v641_v51 = vpop.xlane.xlu2 %640 }
 0x2c2   :  { %v645_v55 = vsub.f32 %v627_v37, %v641_v51 }
 0x2c4   :  { %v1755_v56 = vpop.eup %1754  ;;  %v652_v58 = vmul.f32 1.442695, %v645_v55 }
 0x2c5   :  { %v660_v59 = vsel %vm525_vm8, %v1755_v56, 0.0  ;;  %v1757_v60 = vpop.eup %1756 }
 0x2c6   :  { %1758 = vpow2.f32 %v652_v58  ;;  %661 = vadd.xlane.f32.xlu2 %v660_v59  ;;  %v657_v63 = vsel %vm525_vm8, %v1757_v60, 0.0  ;;  %v2293_v58 = vld [vmem:[%s2444_s10] ss:$0 sm:$0xff] }
 0x2cc   :  { %v1759_v62 = vpop.eup %1758 }
 0x2cd   :  { %v663_v2 = vsel %vm525_vm8, %v1759_v62, 0.0 }
 0x2ce   :  { %658 = vadd.xlane.f32.xlu2 %v657_v63  ;;  %664 = vadd.xlane.f32.xlu0 %v663_v2 }
 0x316   :  { %v656_v4 = vpop.xlane.xlu1 %655 }
 0x317   :  { %1760 = vrcp.f32 %v656_v4 }
 0x31d   :  { %v1761_v5 = vpop.eup %1760 }
 0x31e   :  { %v670_v8 = vmul.f32 %v1761_v5, %v1753_v42 }
 0x320   :  { %1679 = vmatmul.msk.f32.vlgmr.msra.gmra.mxu0 %vm525_vm8, %v670_v8 }
 0x321   :  { %1690 = vmatpush.xpose.msk.msra.mxu0 %vm525_vm8, %v2179_v57 }
 0x339   :  { %v662_v14 = vpop.xlane.xlu2 %661 }
 0x33a   :  { %1762 = vrcp.f32 %v662_v14 }
 0x340   :  { %v1763_v13 = vpop.eup %1762 }
 0x341   :  { %v672_v15 = vmul.f32 %v1763_v13, %v1755_v56  ;;  %v665_v57 = vpop.xlane.xlu0 %664  ;;  %v659_v16 = vpop.xlane.xlu2 %658 }
 0x342   :  { %1764 = vrcp.f32 %v665_v57 }
 0x343   :  { %1766 = vrcp.f32 %v659_v16  ;;  %1681 = vmatmul.msk.f32.vlgmr.msrb.gmra.mxu2 %vm525_vm8, %v672_v15 }
 0x344   :  { %1694 = vmatpush.xpose.msk.msrb.mxu2 %vm525_vm8, %v2208_v20  ;;  %v490_v20 = vadd.f32 %v2215_v22, %v2230_v33 }
 0x348   :  { %v1765_v17 = vpop.eup %1764 }
 0x349   :  { %v1767_v19 = vpop.eup %1766  ;;  %v673_v18 = vmul.f32 %v1765_v17, %v1759_v62 }
 0x34a   :  { %v671_v24 = vmul.f32 %v1767_v19, %v1757_v60 }
 0x34b   :  { %1682 = vmatmul.msk.f32.vlgmr.msrb.gmra.mxu3 %vm525_vm8, %v673_v18 }
 0x34c   :  { %1680 = vmatmul.msk.f32.vlgmr.msrb.gmra.mxu1 %vm525_vm8, %v671_v24  ;;  %1696 = vmatpush.xpose.msk.msrb.mxu3 %vm525_vm8, %v2210_v21 }
 0x34d   :  { %1692 = vmatpush.xpose.msk.msrb.mxu1 %vm525_vm8, %v2166_v48  ;;  %v424_v48 = vadd.f32 %v2185_v61, %v2226_v28 }
 0x39d   :  { %v694_v26 = vpop.f32.mrf.mxu0 }
 0x39e   :  { %1685 = vmatmul.msk.f32.vlgmr.msra.gmra.mxu1 %vm525_vm8, %v694_v26 }
 0x39f   :  { %1056 = vmatpush.msra.mxu1 %v457_v25 }
 0x3a6   :  { %1693 = vmatmul.msk.f32.vlgmr.msrb.gmra.mxu1 %vm525_vm8, %v2176_v54 }
 0x3a7   :  { %1150 = vmatpush.msrb.mxu1 %v766_v11 }
 0x3c6   :  { %v740_v29 = vpop.f32.mrf.mxu2 }
 0x3c7   :  { %1687 = vmatmul.msk.f32.vlgmr.msra.gmra.mxu2 %vm525_vm8, %v740_v29 }
 0x3c8   :  { %1079 = vmatpush.msra.mxu2 %v490_v20  ;;  %v1272_v20 = vld [vmem:[%s2447_s13 + $0x18] sm:$0xff] }
 0x3c9   :  { %v717_v21 = vpop.f32.mrf.mxu1 }
 0x3ca   :  { %1684 = vmatmul.msk.f32.vlgmr.msrb.gmra.mxu0 %vm525_vm8, %v717_v21  ;;  %v1270_v21 = vld [vmem:[%s2447_s13 + $0x8] sm:$0xff] }
 0x3cb   :  { %1033 = vmatpush.msrb.mxu0 %v424_v48  ;;  %v1271_v48 = vld [vmem:[%s2447_s13 + $0x10] sm:$0xff] }
 0x3ce   :  { %v763_v27 = vpop.f32.mrf.mxu3 }
 0x3cf   :  { %1689 = vmatmul.msk.f32.vlgmr.msra.gmra.mxu3 %vm525_vm8, %v763_v27  ;;  %1695 = vmatmul.msk.f32.vlgmr.msrb.gmra.mxu2 %vm525_vm8, %v2194_v6 }
 0x3d0   :  { %1102 = vmatpush.msra.mxu3 %v523_v52  ;;  %1174 = vmatpush.msrb.mxu2 %v1686_v9  ;;  %v1269_v52 = vld [vmem:[%s2447_s13] sm:$0xff] }
 0x3d2   :  { %1691 = vmatmul.msk.f32.vlgmr.msra.gmra.mxu0 %vm525_vm8, %v2174_v53 }
 0x3d3   :  { %1127 = vmatpush.msra.mxu0 %v1683_v3 }
 0x3d7   :  { %1697 = vmatmul.msk.f32.vlgmr.msrb.gmra.mxu3 %vm525_vm8, %v2196_v7 }
 0x3d8   :  { %1199 = vmatpush.msrb.mxu3 %v1688_v12 }
 0x41b   :  { %v812_v54 = vpop.f32.mrf.mxu1 }
 0x423   :  { %v916_v53 = vpop.f32.mrf.mxu1 }
 0x424   :  { %v974_v36 = vsel %vm525_vm8, %v916_v53, -inf }
 0x447   :  { %v789_v61 = vpop.f32.mrf.mxu0 }
 0x448   :  { %v813_v22 = vadd.f32 %v812_v54, %v789_v61 }
 0x44a   :  { %v837_v23 = vpop.f32.mrf.mxu2 }
 0x44b   :  { %v840_v28 = vadd.f32 %v837_v23, %v813_v22 }
 0x44f   :  { %v890_v30 = vpop.f32.mrf.mxu0 }
 0x450   :  { %v971_v31 = vsel %vm525_vm8, %v890_v30, -inf }
 0x451   :  { %972 = vmax.xlane.f32.xlu2 %v971_v31 }
 0x452   :  { %v863_v6 = vpop.f32.mrf.mxu3  ;;  %v942_v32 = vpop.f32.mrf.mxu2 }
 0x453   :  { %v866_v33 = vadd.f32 %v863_v6, %v840_v28  ;;  %v977_v34 = vsel %vm525_vm8, %v942_v32, -inf }
 0x454   :  { %978 = vmax.xlane.f32.xlu0 %v977_v34 }
 0x455   :  { %v1209_v62 = vadd.f32 %v2293_v58, %v866_v33 }
 0x457   :  { %v1211_v3 = vadd.f32 %v1209_v62, %v1933_v0 }
 0x459   :  { %v1215_v4 = vsel %vm67_vm0, %v1211_v3, 0.0 }
 0x45a   :  { %v968_v35 = vpop.f32.mrf.mxu3 }
 0x45b   :  { %v980_v7 = vsel %vm525_vm8, %v968_v35, -inf }
 0x45c   :  { %981 = vmax.xlane.f32.xlu1 %v980_v7  ;;  %975 = vmax.xlane.f32.xlu0 %v974_v36  ;;  %v2331_v36 = vld [vmem:[%s2446_s12] ss:$0 sm:$0xff] }
 0x4c4   :  { %v973_v37 = vpop.xlane.xlu2 %972 }
 0x4c5   :  { %v983_v38 = vsub.f32 %v890_v30, %v973_v37 }
 0x4c7   :  { %v987_v39 = vmul.f32 1.442695, %v983_v38  ;;  %v979_v40 = vpop.xlane.xlu0 %978 }
 0x4c8   :  { %v985_v41 = vsub.f32 %v942_v32, %v979_v40 }
 0x4c9   :  { %1768 = vpow2.f32 %v987_v39 }
 0x4ca   :  { %v991_v42 = vmul.f32 1.442695, %v985_v41 }
 0x4cc   :  { %1770 = vpow2.f32 %v991_v42 }
 0x4cf   :  { %v1769_v43 = vpop.eup %1768  ;;  %v982_v44 = vpop.xlane.xlu1 %981 }
 0x4d0   :  { %v976_v45 = vpop.xlane.xlu0 %975  ;;  %v986_v46 = vsub.f32 %v968_v35, %v982_v44  ;;  %v995_v49 = vsel %vm525_vm8, %v1769_v43, 0.0 }
 0x4d1   :  { %v984_v47 = vsub.f32 %v916_v53, %v976_v45  ;;  %996 = vadd.xlane.f32.xlu0 %v995_v49  ;;  %v2326_v53 = vld [vmem:[%s2445_s11] ss:$0 sm:$0xff]  ;;  %s1829_s11 = smov 8  }
 0x4d2   :  { %v1771_v50 = vpop.eup %1770  ;;  %v993_v51 = vmul.f32 1.442695, %v986_v46 }
 0x4d3   :  { %v989_v55 = vmul.f32 1.442695, %v984_v47  ;;  %v1001_v56 = vsel %vm525_vm8, %v1771_v50, 0.0 }
 0x4d4   :  { %1772 = vpow2.f32 %v993_v51  ;;  %1002 = vadd.xlane.f32.xlu1 %v1001_v56 }
 0x4d5   :  { %1774 = vpow2.f32 %v989_v55 }
 0x4da   :  { %v1773_v59 = vpop.eup %1772 }
 0x4db   :  { %v1775_v60 = vpop.eup %1774  ;;  %v1004_v63 = vsel %vm525_vm8, %v1773_v59, 0.0 }
 0x4dc   :  { %v998_v2 = vsel %vm525_vm8, %v1775_v60, 0.0  ;;  %1005 = vadd.xlane.f32.xlu2 %v1004_v63  ;;  %v1400_v63 = vld [vmem:[%s2449_s15 + $0x30] sm:$0xff] }
 0x4dd   :  { %999 = vadd.xlane.f32.xlu1 %v998_v2 }
 0x4e4   :  { %1216 = vadd.xlane.f32.xlu2 %v1215_v4  ;;  %v1399_v4 = vld [vmem:[%s2449_s15 + $0x28] sm:$0xff] }
 0x544   :  { %v997_v5 = vpop.xlane.xlu0 %996 }
 0x545   :  { %1776 = vrcp.f32 %v997_v5 }
 0x547   :  { %v1003_v8 = vpop.xlane.xlu1 %1002 }
 0x548   :  { %1778 = vrcp.f32 %v1003_v8 }
 0x54b   :  { %v1777_v9 = vpop.eup %1776 }
 0x54c   :  { %v1011_v11 = vmul.f32 %v1777_v9, %v1769_v43  ;;  %v1398_v9 = vld [vmem:[%s2449_s15 + $0x20] sm:$0xff] }
 0x54e   :  { %v1779_v12 = vpop.eup %1778  ;;  %1698 = vmatmul.msk.f32.vlgmr.msrb.gmra.mxu0 %vm525_vm8, %v1011_v11 }
 0x54f   :  { %v1013_v14 = vmul.f32 %v1779_v12, %v1771_v50  ;;  %v1006_v13 = vpop.xlane.xlu2 %1005  ;;  %1295 = vmatpush.msrb.mxu0 %v1272_v20  ;;  %v2348_v50 = vld [vmem:[%s2448_s14] ss:$0 sm:$0xff] }
 0x550   :  { %v1000_v15 = vpop.xlane.xlu1 %999  ;;  %1780 = vrcp.f32 %v1006_v13 }
 0x551   :  { %1782 = vrcp.f32 %v1000_v15  ;;  %1700 = vmatmul.msk.f32.vlgmr.msra.gmra.mxu2 %vm525_vm8, %v1013_v14  ;;  %1296 = vmatpush.msrb.mxu0 %v1271_v48  ;;  %v1397_v14 = vld [vmem:[%s2449_s15 + $0x18] sm:$0xff]  ;;  %v1396_v15 = vld [vmem:[%s2449_s15 + $0x10] sm:$0xff] }
 0x553   :  { %1297 = vmatpush.msrb.mxu0 %v1270_v21 }
 0x555   :  { %1298 = vmatpush.msrb.mxu0 %v1269_v52 }
 0x556   :  { %v1781_v0 = vpop.eup %1780 }
 0x557   :  { %v1783_v57 = vpop.eup %1782  ;;  %v1014_v16 = vmul.f32 %v1781_v0, %v1773_v59  ;;  %v1217_v17 = vpop.xlane.xlu2 %1216 }
 0x558   :  { %v1012_v19 = vmul.f32 %v1783_v57, %v1775_v60  ;;  %v1221_v18 = vmul.f32 %v1217_v17, %v1944_v10  ;;  %v1394_v17 = vld [vmem:[%s2449_s15] sm:$0xff] }
 0x559   :  { %1701 = vmatmul.msk.f32.vlgmr.msra.gmra.mxu3 %vm525_vm8, %v1014_v16  ;;  %v1395_v16 = vld [vmem:[%s2449_s15 + $0x8] sm:$0xff] }
 0x55a   :  { %v1223_v24 = vsub.f32 %v1211_v3, %v1221_v18  ;;  %1699 = vmatmul.msk.f32.vlgmr.msra.gmra.mxu1 %vm525_vm8, %v1012_v19 }
 0x55c   :  { %v1225_v25 = vmul.f32 %v1223_v24, %v1223_v24 }
 0x55e   :  { %v1227_v26 = vsel %vm67_vm0, %v1225_v25, 0.0 }
 0x55f   :  { %1228 = vadd.xlane.f32.xlu1 %v1227_v26 }
 0x5cb   :  { %v1035_v29 = vpop.f32.mrf.mxu0 }
 0x5cc   :  { %1704 = vmatmul.msk.f32.vlgmr.msrb.gmra.mxu1 %vm525_vm8, %v1035_v29 }
 0x5d2   :  { %v1229_v27 = vpop.xlane.xlu1 %1228 }
 0x5d3   :  { %v1233_v54 = vmul.f32 %v1229_v27, %v1944_v10 }
 0x5d4   :  { %v1081_v61 = vpop.f32.mrf.mxu2 }
 0x5d5   :  { %v1235_v22 = vadd.f32 1e-06, %v1233_v54  ;;  %1706 = vmatmul.msk.f32.vlgmr.msrb.gmra.mxu2 %vm525_vm8, %v1081_v61 }
 0x5d7   :  { %1784 = vrsqrt.f32 %v1235_v22  ;;  %v1058_v23 = vpop.f32.mrf.mxu1  ;;  %vm1243_vm10 = vweird.f32 %v1235_v22 }
 0x5d8   :  { %1703 = vmatmul.msk.f32.vlgmr.msra.gmra.mxu0 %vm525_vm8, %v1058_v23 }
 0x5dc   :  { %v1104_v28 = vpop.f32.mrf.mxu3 }
 0x5dd   :  { %v1785_v30 = vpop.eup %1784  ;;  %1708 = vmatmul.msk.f32.vlgmr.msrb.gmra.mxu3 %vm525_vm8, %v1104_v28 }
 0x5de   :  { %v1238_v31 = vmul.f32 %v1785_v30, %v1235_v22  ;;  %vm1244_vm9 = vweird.f32 %v1785_v30 }
 0x5df   :  { %vm1245_vm11 = vmor %vm1243_vm10, %vm1244_vm9 }
 0x5e0   :  { %v1239_v6 = vmul.f32 %v1785_v30, %v1238_v31 }
 0x5e2   :  { %v1240_v32 = vmul.f32 0.5, %v1239_v6 }
 0x5e4   :  { %v1241_v33 = vsub.f32 1.5, %v1240_v32 }
 0x5e6   :  { %v1242_v34 = vmul.f32 %v1785_v30, %v1241_v33 }
 0x5e8   :  { %v1246_v35 = vsel %vm1245_vm11, %v1785_v30, %v1242_v34 }
 0x5e9   :  { %v1257_v7 = vmul.f32 %v1246_v35, %v1223_v24 }
 0x5eb   :  { %v1262_v37 = vmul.f32 %v2326_v53, %v1257_v7 }
 0x5ed   :  { %v2335_v38 = vadd.f32 %v2331_v36, %v1262_v37 }
 0x5ef   :  { %1709 = vmatmul.msk.f32.vlgmr.msrb.gmra.mxu0 %vm67_vm0, %v2335_v38 }
 0x649   :  { %v1152_v40 = vpop.f32.mrf.mxu1 }
 0x655   :  { %v1129_v39 = vpop.f32.mrf.mxu0 }
 0x656   :  { %v1153_v42 = vadd.f32 %v1152_v40, %v1129_v39 }
 0x658   :  { %v1176_v41 = vpop.f32.mrf.mxu2 }
 0x659   :  { %v1179_v43 = vadd.f32 %v1176_v41, %v1153_v42 }
 0x660   :  { %v1201_v44 = vpop.f32.mrf.mxu3 }
 0x661   :  { %v1204_v45 = vadd.f32 %v1201_v44, %v1179_v43  ;;  %v2386_v44 = vld [vmem:[%s2450_s16] ss:$0 sm:$0xff] }
 0x663   :  { %v1210_v46 = vadd.f32 %v2293_v58, %v1204_v45 }
 0x665   :  { %v2341_v47 = vadd.f32 %v1210_v46, %v1938_v1  ;;  %v1401_v1 = vld [vmem:[%s2449_s15 + $0x38] sm:$0xff] }
 0x666   :  { %1421 = vmatpush.msra.mxu1 %v1401_v1 }
 0x667   :  { %v1218_v49 = vsel %vm67_vm0, %v2341_v47, 0.0 }
 0x668   :  { %1219 = vadd.xlane.f32.xlu0 %v1218_v49  ;;  %1422 = vmatpush.msra.mxu1 %v1400_v63 }
 0x66a   :  { %1423 = vmatpush.msra.mxu1 %v1399_v4 }
 0x66c   :  { %v1300_v51 = vpop.f32.mrf.mxu0  ;;  %1424 = vmatpush.msra.mxu1 %v1398_v9 }
 0x66d   :  { %v1301_v55 = vadd.f32 %v2348_v50, %v1300_v51 }
 0x66e   :  { %1425 = vmatpush.msra.mxu1 %v1397_v14 }
 0x66f   :  { %v1308_v56 = vmul.f32 0.70710677, %v1301_v55  ;;  %v1306_v35 = vmul.f32 0.5, %v1301_v55 }
 0x670   :  { %1426 = vmatpush.msra.mxu1 %v1396_v15 }
 0x671   :  { %v1310_v59 = vmul.f32 %v1308_v56, %v1308_v56 }
 0x672   :  { %1427 = vmatpush.msra.mxu1 %v1395_v16 }
 0x673   :  { %v1311_v60 = vmin.f32 %v1310_v59, 16.0 }
 0x674   :  { %1428 = vmatpush.msra.mxu1 %v1394_v17 }
 0x675   :  { %v1312_v58 = vmul.f32 2.1237322e-06, %v1311_v60  ;;  %v1323_v62 = vmul.f32 3.8918573e-05, %v1311_v60 }
 0x677   :  { %v1313_v2 = vadd.f32 0.00028619796, %v1312_v58  ;;  %v1324_v3 = vadd.f32 0.001143296, %v1323_v62 }
 0x679   :  { %v1314_v5 = vmul.f32 %v1313_v2, %v1311_v60  ;;  %v1325_v8 = vmul.f32 %v1324_v3, %v1311_v60 }
 0x67b   :  { %v1326_v11 = vadd.f32 0.014752088, %v1325_v8  ;;  %v1315_v12 = vadd.f32 0.0036580483, %v1314_v5 }
 0x67d   :  { %v1327_v13 = vmul.f32 %v1326_v11, %v1311_v60  ;;  %v1316_v57 = vmul.f32 %v1315_v12, %v1311_v60 }
 0x67f   :  { %v1328_v0 = vadd.f32 0.112945676, %v1327_v13  ;;  %v1317_v24 = vadd.f32 0.05243302, %v1316_v57 }
 0x681   :  { %v1329_v19 = vmul.f32 %v1328_v0, %v1311_v60  ;;  %v1318_v20 = vmul.f32 %v1317_v24, %v1311_v60 }
 0x683   :  { %v1330_v18 = vadd.f32 0.4994258, %v1329_v19  ;;  %v1319_v29 = vadd.f32 0.18741608, %v1318_v20 }
 0x685   :  { %v1331_v25 = vmul.f32 %v1330_v18, %v1311_v60  ;;  %v1320_v21 = vmul.f32 %v1319_v29, %v1311_v60 }
 0x687   :  { %v1332_v26 = vadd.f32 1.0, %v1331_v25  ;;  %v1321_v61 = vadd.f32 1.1283791, %v1320_v21 }
 0x689   :  { %1786 = vrcp.f32 %v1332_v26  ;;  %v1344_v54 = vand.u32 2147483648, %v1332_v26  ;;  %v1342_v23 = vand.u32 2147483647, %v1332_v26  ;;  %vm1338_vm13 = vweird.f32 %v1332_v26 }
 0x68a   :  { %v1322_v31 = vmul.f32 %v1321_v61, %v1308_v56 }
 0x68b   :  { %v1345_v30 = vor.u32 1.1754944e-38, %v1344_v54  ;;  %vm1343_vm15 = vcmp.eq.f32.partialorder %v1342_v23, 8.507059e+37 }
 0x68f   :  { %v1787_v48 = vpop.eup %1786 }
 0x690   :  { %v1334_v52 = vmul.f32 %v1787_v48, %v1332_v26  ;;  %vm1339_vm12 = vweird.f32 %v1787_v48 }
 0x691   :  { %vm1340_vm14 = vmor %vm1338_vm13, %vm1339_vm12 }
 0x692   :  { %v1335_v27 = vsub.f32 1.0, %v1334_v52 }
 0x694   :  { %v1336_v22 = vmul.f32 %v1787_v48, %v1335_v27 }
 0x696   :  { %v1337_v28 = vadd.f32 %v1787_v48, %v1336_v22 }
 0x698   :  { %v1341_v6 = vsel %vm1340_vm14, %v1787_v48, %v1337_v28 }
 0x699   :  { %v1346_v32 = vsel %vm1343_vm15, %v1345_v30, %v1341_v6 }
 0x69a   :  { %v1347_v33 = vmul.f32 %v1346_v32, %v1322_v31 }
 0x69c   :  { %v1711_v34 = vclamps-f32 %v1347_v33, 1.0 }
 0x69e   :  { %v1390_v7 = vadd.f32 1.0, %v1711_v34 }
 0x6a0   :  { %v1392_v37 = vmul.f32 %v1390_v7, %v1306_v35 }
 0x6a2   :  { %1713 = vmatmul.msk.f32.vlgmr.msra.gmra.mxu1 %vm1406_vm1, %v1392_v37 }
 0x6db   :  { %v1220_v39 = vpop.xlane.xlu0 %1219 }
 0x6dc   :  { %v1222_v40 = vmul.f32 %v1220_v39, %v1944_v10 }
 0x6de   :  { %v2378_v41 = vsub.f32 %v2341_v47, %v1222_v40 }
 0x6e0   :  { %v1226_v42 = vmul.f32 %v2378_v41, %v2378_v41 }
 0x6e2   :  { %v1230_v43 = vsel %vm67_vm0, %v1226_v42, 0.0 }
 0x6e3   :  { %1231 = vadd.xlane.f32.xlu2 %v1230_v43 }
 0x71f   :  { %v1430_v45 = vpop.f32.mrf.mxu1 }
 0x720   :  { %v1431_v46 = vadd.f32 %v2386_v44, %v1430_v45 }
 0x722   :  { %v1438_v49 = vmul.f32 0.70710677, %v1431_v46  ;;  %v1436_v27 = vmul.f32 0.5, %v1431_v46 }
 0x724   :  { %v1440_v51 = vmul.f32 %v1438_v49, %v1438_v49 }
 0x726   :  { %v1441_v55 = vmin.f32 %v1440_v51, 16.0 }
 0x728   :  { %v1442_v56 = vmul.f32 2.1237322e-06, %v1441_v55  ;;  %v1453_v47 = vmul.f32 3.8918573e-05, %v1441_v55 }
 0x72a   :  { %v1443_v59 = vadd.f32 0.00028619796, %v1442_v56  ;;  %v1454_v60 = vadd.f32 0.001143296, %v1453_v47 }
 0x72c   :  { %v1444_v1 = vmul.f32 %v1443_v59, %v1441_v55  ;;  %v1455_v58 = vmul.f32 %v1454_v60, %v1441_v55 }
 0x72e   :  { %v1456_v62 = vadd.f32 0.014752088, %v1455_v58  ;;  %v1445_v63 = vadd.f32 0.0036580483, %v1444_v1 }
 0x730   :  { %v1457_v2 = vmul.f32 %v1456_v62, %v1441_v55  ;;  %v1446_v4 = vmul.f32 %v1445_v63, %v1441_v55 }
 0x732   :  { %v1458_v3 = vadd.f32 0.112945676, %v1457_v2  ;;  %v1447_v9 = vadd.f32 0.05243302, %v1446_v4 }
 0x734   :  { %v1459_v5 = vmul.f32 %v1458_v3, %v1441_v55  ;;  %v1448_v14 = vmul.f32 %v1447_v9, %v1441_v55 }
 0x736   :  { %v1460_v8 = vadd.f32 0.4994258, %v1459_v5  ;;  %v1449_v13 = vadd.f32 0.18741608, %v1448_v14 }
 0x738   :  { %v1461_v11 = vmul.f32 %v1460_v8, %v1441_v55  ;;  %v1450_v0 = vmul.f32 %v1449_v13, %v1441_v55 }
 0x73a   :  { %v1462_v12 = vadd.f32 1.0, %v1461_v11  ;;  %v1451_v19 = vadd.f32 1.1283791, %v1450_v0 }
 0x73c   :  { %1788 = vrcp.f32 %v1462_v12  ;;  %v1474_v17 = vand.u32 2147483648, %v1462_v12  ;;  %v1472_v24 = vand.u32 2147483647, %v1462_v12  ;;  %vm1468_vm3 = vweird.f32 %v1462_v12 }
 0x73d   :  { %v1452_v20 = vmul.f32 %v1451_v19, %v1438_v49 }
 0x73e   :  { %v1475_v26 = vor.u32 1.1754944e-38, %v1474_v17  ;;  %vm1473_vm5 = vcmp.eq.f32.partialorder %v1472_v24, 8.507059e+37 }
 0x742   :  { %v1789_v15 = vpop.eup %1788 }
 0x743   :  { %v1464_v57 = vmul.f32 %v1789_v15, %v1462_v12  ;;  %vm1469_vm2 = vweird.f32 %v1789_v15 }
 0x744   :  { %vm1470_vm4 = vmor %vm1468_vm3, %vm1469_vm2 }
 0x745   :  { %v1465_v16 = vsub.f32 1.0, %v1464_v57 }
 0x747   :  { %v1466_v18 = vmul.f32 %v1789_v15, %v1465_v16 }
 0x749   :  { %v1467_v25 = vadd.f32 %v1789_v15, %v1466_v18 }
 0x74b   :  { %v1471_v29 = vsel %vm1470_vm4, %v1789_v15, %v1467_v25 }
 0x74c   :  { %v1476_v48 = vsel %vm1473_vm5, %v1475_v26, %v1471_v29 }
 0x74d   :  { %v1477_v21 = vmul.f32 %v1476_v48, %v1452_v20 }
 0x74f   :  { %v1715_v52 = vclamps-f32 %v1477_v21, 1.0 }
 0x751   :  { %v1520_v54 = vadd.f32 1.0, %v1715_v52 }
 0x753   :  { %v1522_v61 = vmul.f32 %v1520_v54, %v1436_v27 }
 0x755   :  { %v1524_v22 = vadd.f32 %v1522_v61, %v2335_v38 }
 0x756   :  { %v1232_v23 = vpop.xlane.xlu2 %1231 }
 0x757   :  { %v1234_v28 = vmul.f32 %v1232_v23, %v1944_v10  ;;  %v1528_v30 = vsel %vm67_vm0, %v1524_v22, 0.0 }
 0x758   :  { %1529 = vadd.xlane.f32.xlu0 %v1528_v30 }
 0x759   :  { %v1236_v31 = vadd.f32 1e-06, %v1234_v28 }
 0x75b   :  { %1790 = vrsqrt.f32 %v1236_v31  ;;  %vm1253_vm7 = vweird.f32 %v1236_v31 }
 0x761   :  { %v1791_v6 = vpop.eup %1790 }
 0x762   :  { %v1248_v32 = vmul.f32 %v1791_v6, %v1236_v31  ;;  %vm1254_vm6 = vweird.f32 %v1791_v6 }
 0x763   :  { %vm1255_vm8 = vmor %vm1253_vm7, %vm1254_vm6 }
 0x764   :  { %v1249_v33 = vmul.f32 %v1791_v6, %v1248_v32 }
 0x766   :  { %v1250_v34 = vmul.f32 0.5, %v1249_v33 }
 0x768   :  { %v1251_v35 = vsub.f32 1.5, %v1250_v34  ;;  %v2411_v34 = vld [vmem:[%s2451_s17] ss:$0 sm:$0xff]  ;;  %s1827_s17 = smov [#allocation2]  }
 0x76a   :  { %v1252_v7 = vmul.f32 %v1791_v6, %v1251_v35 }
 0x76c   :  { %v1256_v37 = vsel %vm1255_vm8, %v1791_v6, %v1252_v7 }
 0x76d   :  { %v1258_v38 = vmul.f32 %v1256_v37, %v2378_v41  ;;  %v2417_v37 = vld [vmem:[%s2452_s18] ss:$0 sm:$0xff]  ;;  %s1588_s18 = sshll.u32 %s1827_s17, 4  ;;  %s1589_s18 = int_to_ptr.vmem [resolvable:$true] %s1588_s18 }
 0x76f   :  { %v1263_v39 = vmul.f32 %v2326_v53, %v1258_v38 }
 0x771   :  { %v2395_v40 = vadd.f32 %v2331_v36, %v1263_v39 }
 0x773   :  { %1710 = vmatmul.msk.f32.gmra.mxu0 %vm67_vm0, %v2395_v40 }
 0x7cb   :  { %v1530_v42 = vpop.xlane.xlu0 %1529 }
 0x7cc   :  { %v1534_v43 = vmul.f32 %v1530_v42, %v1944_v10 }
 0x7ce   :  { %v2400_v45 = vsub.f32 %v1524_v22, %v1534_v43 }
 0x7d0   :  { %v1538_v46 = vmul.f32 %v2400_v45, %v2400_v45 }
 0x7d2   :  { %v1540_v49 = vsel %vm67_vm0, %v1538_v46, 0.0 }
 0x7d3   :  { %1541 = vadd.xlane.f32.xlu2 %v1540_v49 }
 0x7f0   :  { %v1303_v41 = vpop.f32.mrf.mxu0 }
 0x7f1   :  { %v1304_v53 = vadd.f32 %v2348_v50, %v1303_v41 }
 0x7f3   :  { %v1309_v51 = vmul.f32 0.70710677, %v1304_v53  ;;  %v1307_v52 = vmul.f32 0.5, %v1304_v53 }
 0x7f5   :  { %v1350_v36 = vmul.f32 %v1309_v51, %v1309_v51 }
 0x7f7   :  { %v1351_v55 = vmin.f32 %v1350_v36, 16.0 }
 0x7f9   :  { %v1352_v56 = vmul.f32 2.1237322e-06, %v1351_v55  ;;  %v1363_v47 = vmul.f32 3.8918573e-05, %v1351_v55 }
 0x7fb   :  { %v1353_v59 = vadd.f32 0.00028619796, %v1352_v56  ;;  %v1364_v60 = vadd.f32 0.001143296, %v1363_v47 }
 0x7fd   :  { %v1354_v1 = vmul.f32 %v1353_v59, %v1351_v55  ;;  %v1365_v58 = vmul.f32 %v1364_v60, %v1351_v55 }
 0x7ff   :  { %v1366_v62 = vadd.f32 0.014752088, %v1365_v58  ;;  %v1355_v63 = vadd.f32 0.0036580483, %v1354_v1 }
 0x801   :  { %v1367_v2 = vmul.f32 %v1366_v62, %v1351_v55  ;;  %v1356_v4 = vmul.f32 %v1355_v63, %v1351_v55 }
 0x803   :  { %v1368_v3 = vadd.f32 0.112945676, %v1367_v2  ;;  %v1357_v9 = vadd.f32 0.05243302, %v1356_v4 }
 0x805   :  { %v1369_v5 = vmul.f32 %v1368_v3, %v1351_v55  ;;  %v1358_v50 = vmul.f32 %v1357_v9, %v1351_v55 }
 0x807   :  { %v1370_v8 = vadd.f32 0.4994258, %v1369_v5  ;;  %v1359_v14 = vadd.f32 0.18741608, %v1358_v50 }
 0x809   :  { %v1371_v11 = vmul.f32 %v1370_v8, %v1351_v55  ;;  %v1360_v15 = vmul.f32 %v1359_v14, %v1351_v55 }
 0x80b   :  { %v1372_v12 = vadd.f32 1.0, %v1371_v11  ;;  %v1361_v17 = vadd.f32 1.1283791, %v1360_v15 }
 0x80d   :  { %1792 = vrcp.f32 %v1372_v12  ;;  %v1384_v16 = vand.u32 2147483648, %v1372_v12  ;;  %v1382_v18 = vand.u32 2147483647, %v1372_v12  ;;  %vm1378_vm10 = vweird.f32 %v1372_v12 }
 0x80e   :  { %v1362_v26 = vmul.f32 %v1361_v17, %v1309_v51 }
 0x80f   :  { %v1385_v25 = vor.u32 1.1754944e-38, %v1384_v16  ;;  %vm1383_vm12 = vcmp.eq.f32.partialorder %v1382_v18, 8.507059e+37 }
 0x813   :  { %v1793_v13 = vpop.eup %1792 }
 0x814   :  { %v1374_v0 = vmul.f32 %v1793_v13, %v1372_v12  ;;  %vm1379_vm9 = vweird.f32 %v1793_v13 }
 0x815   :  { %vm1380_vm11 = vmor %vm1378_vm10, %vm1379_vm9 }
 0x816   :  { %v1375_v57 = vsub.f32 1.0, %v1374_v0 }
 0x818   :  { %v1376_v19 = vmul.f32 %v1793_v13, %v1375_v57 }
 0x81a   :  { %v1377_v24 = vadd.f32 %v1793_v13, %v1376_v19 }
 0x81c   :  { %v1381_v20 = vsel %vm1380_vm11, %v1793_v13, %v1377_v24 }
 0x81d   :  { %v1386_v29 = vsel %vm1383_vm12, %v1385_v25, %v1381_v20 }
 0x81e   :  { %v1387_v48 = vmul.f32 %v1386_v29, %v1362_v26 }
 0x820   :  { %v1712_v21 = vclamps-f32 %v1387_v48, 1.0 }
 0x822   :  { %v1391_v27 = vadd.f32 1.0, %v1712_v21 }
 0x824   :  { %v1393_v54 = vmul.f32 %v1391_v27, %v1307_v52 }
 0x826   :  { %1714 = vmatmul.msk.f32.gmra.mxu1 %vm1406_vm1, %v1393_v54 }
 0x846   :  { %v1542_v61 = vpop.xlane.xlu2 %1541 }
 0x847   :  { %v1546_v22 = vmul.f32 %v1542_v61, %v1944_v10 }
 0x849   :  { %v1548_v23 = vadd.f32 1e-06, %v1546_v22 }
 0x84b   :  { %1794 = vrsqrt.f32 %v1548_v23  ;;  %vm1556_vm14 = vweird.f32 %v1548_v23 }
 0x851   :  { %v1795_v28 = vpop.eup %1794 }
 0x852   :  { %v1551_v30 = vmul.f32 %v1795_v28, %v1548_v23  ;;  %vm1557_vm13 = vweird.f32 %v1795_v28 }
 0x853   :  { %vm1558_vm15 = vmor %vm1556_vm14, %vm1557_vm13 }
 0x854   :  { %v1552_v31 = vmul.f32 %v1795_v28, %v1551_v30 }
 0x856   :  { %v1553_v6 = vmul.f32 0.5, %v1552_v31 }
 0x858   :  { %v1554_v32 = vsub.f32 1.5, %v1553_v6 }
 0x85a   :  { %v1555_v33 = vmul.f32 %v1795_v28, %v1554_v32 }
 0x85c   :  { %v1559_v35 = vsel %vm1558_vm15, %v1795_v28, %v1555_v33 }
 0x85d   :  { %v1570_v7 = vmul.f32 %v1559_v35, %v2400_v45 }
 0x85f   :  { %v1575_v38 = vmul.f32 %v2411_v34, %v1570_v7 }
 0x861   :  { %v1580_v39 = vadd.f32 %v2417_v37, %v1575_v38 }
 0x863   :  { %1582 = vst.msk [vmem:[#allocation2] sm:$0xff] %vm67_vm0, %v1580_v39 }
 0x8a3   :  { %v1433_v42 = vpop.f32.mrf.mxu1 }
 0x8a4   :  { %v1434_v43 = vadd.f32 %v2386_v44, %v1433_v42 }
 0x8a6   :  { %v1439_v46 = vmul.f32 0.70710677, %v1434_v43  ;;  %v1437_v25 = vmul.f32 0.5, %v1434_v43 }
 0x8a8   :  { %v1480_v49 = vmul.f32 %v1439_v46, %v1439_v46 }
 0x8aa   :  { %v1481_v41 = vmin.f32 %v1480_v49, 16.0 }
 0x8ac   :  { %v1482_v53 = vmul.f32 2.1237322e-06, %v1481_v41  ;;  %v1493_v51 = vmul.f32 3.8918573e-05, %v1481_v41 }
 0x8ae   :  { %v1483_v45 = vadd.f32 0.00028619796, %v1482_v53  ;;  %v1494_v36 = vadd.f32 0.001143296, %v1493_v51 }
 0x8b0   :  { %v1484_v55 = vmul.f32 %v1483_v45, %v1481_v41  ;;  %v1495_v56 = vmul.f32 %v1494_v36, %v1481_v41 }
 0x8b2   :  { %v1496_v47 = vadd.f32 0.014752088, %v1495_v56  ;;  %v1485_v59 = vadd.f32 0.0036580483, %v1484_v55 }
 0x8b4   :  { %v1497_v60 = vmul.f32 %v1496_v47, %v1481_v41  ;;  %v1486_v58 = vmul.f32 %v1485_v59, %v1481_v41 }
 0x8b6   :  { %v1498_v1 = vadd.f32 0.112945676, %v1497_v60  ;;  %v1487_v2 = vadd.f32 0.05243302, %v1486_v58 }
 0x8b8   :  { %v1499_v62 = vmul.f32 %v1498_v1, %v1481_v41  ;;  %v1488_v44 = vmul.f32 %v1487_v2, %v1481_v41 }
 0x8ba   :  { %v1500_v63 = vadd.f32 0.4994258, %v1499_v62  ;;  %v1489_v5 = vadd.f32 0.18741608, %v1488_v44 }
 0x8bc   :  { %v1501_v3 = vmul.f32 %v1500_v63, %v1481_v41  ;;  %v1490_v9 = vmul.f32 %v1489_v5, %v1481_v41 }
 0x8be   :  { %v1502_v4 = vadd.f32 1.0, %v1501_v3  ;;  %v1491_v14 = vadd.f32 1.1283791, %v1490_v9 }
 0x8c0   :  { %1796 = vrcp.f32 %v1502_v4  ;;  %v1514_v50 = vand.u32 2147483648, %v1502_v4  ;;  %v1512_v15 = vand.u32 2147483647, %v1502_v4  ;;  %vm1508_vm2 = vweird.f32 %v1502_v4 }
 0x8c1   :  { %v1492_v16 = vmul.f32 %v1491_v14, %v1439_v46 }
 0x8c2   :  { %v1515_v57 = vor.u32 1.1754944e-38, %v1514_v50  ;;  %vm1513_vm4 = vcmp.eq.f32.partialorder %v1512_v15, 8.507059e+37 }
 0x8c6   :  { %v1797_v8 = vpop.eup %1796 }
 0x8c7   :  { %v1504_v11 = vmul.f32 %v1797_v8, %v1502_v4  ;;  %vm1509_vm1 = vweird.f32 %v1797_v8 }
 0x8c8   :  { %vm1510_vm3 = vmor %vm1508_vm2, %vm1509_vm1 }
 0x8c9   :  { %v1505_v12 = vsub.f32 1.0, %v1504_v11 }
 0x8cb   :  { %v1506_v13 = vmul.f32 %v1797_v8, %v1505_v12 }
 0x8cd   :  { %v1507_v0 = vadd.f32 %v1797_v8, %v1506_v13 }
 0x8cf   :  { %v1511_v17 = vsel %vm1510_vm3, %v1797_v8, %v1507_v0 }
 0x8d0   :  { %v1516_v19 = vsel %vm1513_vm4, %v1515_v57, %v1511_v17 }
 0x8d1   :  { %v1517_v18 = vmul.f32 %v1516_v19, %v1492_v16 }
 0x8d3   :  { %v1716_v24 = vclamps-f32 %v1517_v18, 1.0 }
 0x8d5   :  { %v1521_v26 = vadd.f32 1.0, %v1716_v24 }
 0x8d7   :  { %v1523_v20 = vmul.f32 %v1521_v26, %v1437_v25 }
 0x8d9   :  { %v1525_v29 = vadd.f32 %v1523_v20, %v2395_v40 }
 0x8db   :  { %v1531_v48 = vsel %vm67_vm0, %v1525_v29, 0.0 }
 0x8dc   :  { %1532 = vadd.xlane.f32.xlu1 %v1531_v48 }
 0x94f   :  { %v1533_v21 = vpop.xlane.xlu1 %1532 }
 0x950   :  { %v1535_v52 = vmul.f32 %v1533_v21, %v1944_v10 }
 0x952   :  { %v1537_v27 = vsub.f32 %v1525_v29, %v1535_v52 }
 0x954   :  { %v1539_v54 = vmul.f32 %v1537_v27, %v1537_v27 }
 0x956   :  { %v1543_v61 = vsel %vm67_vm0, %v1539_v54, 0.0 }
 0x957   :  { %1544 = vadd.xlane.f32.xlu0 %v1543_v61 }
 0x9ca   :  { %v1545_v22 = vpop.xlane.xlu0 %1544 }
 0x9cb   :  { %v1547_v23 = vmul.f32 %v1545_v22, %v1944_v10 }
 0x9cd   :  { %v1549_v28 = vadd.f32 1e-06, %v1547_v23 }
 0x9cf   :  { %1798 = vrsqrt.f32 %v1549_v28  ;;  %vm1566_vm6 = vweird.f32 %v1549_v28 }
 0x9d5   :  { %v1799_v30 = vpop.eup %1798 }
 0x9d6   :  { %v1561_v31 = vmul.f32 %v1799_v30, %v1549_v28  ;;  %vm1567_vm5 = vweird.f32 %v1799_v30 }
 0x9d7   :  { %vm1568_vm7 = vmor %vm1566_vm6, %vm1567_vm5 }
 0x9d8   :  { %v1562_v6 = vmul.f32 %v1799_v30, %v1561_v31 }
 0x9da   :  { %v1563_v40 = vmul.f32 0.5, %v1562_v6 }
 0x9dc   :  { %v1564_v32 = vsub.f32 1.5, %v1563_v40 }
 0x9de   :  { %v1565_v33 = vmul.f32 %v1799_v30, %v1564_v32 }
 0x9e0   :  { %v1569_v35 = vsel %vm1568_vm7, %v1799_v30, %v1565_v33 }
 0x9e1   :  { %v1571_v7 = vmul.f32 %v1569_v35, %v1537_v27 }
 0x9e3   :  { %v1576_v10 = vmul.f32 %v2411_v34, %v1571_v7 }
 0x9e5   :  { %v1581_v38 = vadd.f32 %v2417_v37, %v1576_v10 }
 0x9e7   :  { %1583 = vst.msk [vmem:[#allocation2 + $0x8] sm:$0xff] %vm67_vm0, %v1581_v38 }
 0x9e8   :  { %1596 = dma.vmem_to_hbm [thread:$0]  %s1589_s18, 256, %s1591_s6, [#allocation3], %s1828_s2, %s1828_s2, %s1829_s11  }
 0x9e9   :  { %1824 = dma.done.wait [#allocation3], 256  }
 0x9ea   :  { %1825 = vsyncadd [#allocation3], 4294967040 }
 0x9eb   :  { %1601 = vsyncpa [#allocation3], 1 }

</bundles_post_ra>
